<compile_context>
chip_gen: v6e
topology: v6e:2x2x1
jax: 0.10.0
libtpu: 0.0.40
codegen_flags: <defaults>
</compile_context>

<pallas_src>
import functools

import jax
import jax.numpy as jnp
import numpy as np
from jax.experimental import pallas as pl
from jax.experimental.pallas import tpu as pltpu


# ------------------------------ Pallas kernel ---------------------------------

def _conv_bn_relu_kernel(p_ref, w_ref, b_ref, g_ref, beta_ref, o_ref, *,
                         inv_n, eps):
    # Conv2d as a single dense GEMM over im2col rows: (N, K) @ (K, O) + bias.
    acc = jnp.dot(p_ref[...], w_ref[...],
                  preferred_element_type=jnp.float32) + b_ref[...]

    # BatchNorm2d forward in training mode (default for a fresh nn.Module):
    # per-channel batch statistics over all N = B*H_out*W_out positions,
    # biased variance, eps = 1e-5, then affine gamma/beta.
    mean = jnp.sum(acc, axis=0, keepdims=True) * inv_n            # (1, O)
    centered = acc - mean
    var = jnp.sum(centered * centered, axis=0, keepdims=True) * inv_n
    y = centered * jax.lax.rsqrt(var + eps) * g_ref[...] + beta_ref[...]

    # ReLU, lane-dense store (O is a multiple of 128 in the example).
    o_ref[...] = jnp.maximum(y, 0.0)


# --------------------------------- wrapper -------------------------------------

def basic_conv2d_forward(x, params, *, stride=1, padding=1):
    """Fused Conv2d(bias=True) + BatchNorm2d(batch stats, affine) + ReLU.

    x: (B, C, H, W) float32 (PyTorch NCHW layout).
    params: conv_w (O, C, KH, KW), conv_b (O,), bn_g (O,), bn_b (O,).
    Returns: (B, O, H_out, W_out) float32.
    """
    b, c, h, w = x.shape
    o, _, kh, kw = params["conv_w"].shape

    # --------- layout-only glue (no arithmetic): pad + im2col + reshapes -------
    x_nhwc = jnp.transpose(x, (0, 2, 3, 1))
    xp = jnp.pad(x_nhwc, ((0, 0), (padding, padding), (padding, padding), (0, 0)))
    hp, wp = h + 2 * padding, w + 2 * padding
    ho = (hp - kh) // stride + 1
    wo = (wp - kw) // stride + 1
    cols = []
    for i in range(kh):
        for j in range(kw):
            cols.append(xp[:, i:i + stride * ho:stride,
                           j:j + stride * wo:stride, :])
    # feature order of a patch row is (i, j, c)
    patches = jnp.concatenate(cols, axis=-1).reshape(b * ho * wo, kh * kw * c)

    # PyTorch conv weight (O, C, KH, KW) -> (KH*KW*C, O), matching (i, j, c).
    w_mat = jnp.transpose(params["conv_w"], (2, 3, 1, 0)).reshape(kh * kw * c, o)
    conv_b = params["conv_b"].reshape(1, o)
    bn_g = params["bn_g"].reshape(1, o)
    bn_b = params["bn_b"].reshape(1, o)

    n_rows = b * ho * wo
    kernel = functools.partial(_conv_bn_relu_kernel,
                               inv_n=1.0 / float(n_rows), eps=1e-5)

    def full(shape):
        return pl.BlockSpec(shape, lambda _i, _s=shape: (0,) * len(_s))

    # Single grid step: everything (≈200 KiB) stays resident in VMEM; the
    # batch-norm statistics couple every row, so one fused step avoids any
    # HBM round-trip of the conv activations.
    # TODO(synk): at production sizes (N*O too big for VMEM) split into a
    # row-tiled stats pass + normalize pass instead of one resident block.
    y2d = pl.pallas_call(
        kernel,
        out_shape=jax.ShapeDtypeStruct((n_rows, o), jnp.float32),
        grid=(1,),
        in_specs=[full((n_rows, kh * kw * c)),
                  full((kh * kw * c, o)),
                  full((1, o)), full((1, o)), full((1, o))],
        out_specs=full((n_rows, o)),
        compiler_params=pltpu.CompilerParams(
            dimension_semantics=("arbitrary",)),
    )(patches, w_mat, conv_b, bn_g, bn_b)

    return jnp.transpose(y2d.reshape(b, ho, wo, o), (0, 3, 1, 2))


# --------------------------- pure-JAX reference (sanity) -----------------------

def basic_conv2d_reference(x, params, *, stride=1, padding=1):
    y = jax.lax.conv_general_dilated(
        x, params["conv_w"], window_strides=(stride, stride),
        padding=[(padding, padding), (padding, padding)],
        dimension_numbers=("NCHW", "OIHW", "NCHW"))
    y = y + params["conv_b"].reshape(1, -1, 1, 1)
    mean = jnp.mean(y, axis=(0, 2, 3), keepdims=True)
    var = jnp.mean((y - mean) ** 2, axis=(0, 2, 3), keepdims=True)
    y = (y - mean) * jax.lax.rsqrt(var + 1e-5)
    y = y * params["bn_g"].reshape(1, -1, 1, 1) + params["bn_b"].reshape(1, -1, 1, 1)
    return jnp.maximum(y, 0.0)


# ------------------------- deterministic parameter init -------------------------

def init_params(key, *, in_channels, out_channels, kernel_size):
    k1, k2, k3, k4 = jax.random.split(key, 4)
    fan_in = in_channels * kernel_size * kernel_size
    s = 1.0 / float(np.sqrt(fan_in))
    return {
        "conv_w": (s * jax.random.normal(
            k1, (out_channels, in_channels, kernel_size, kernel_size))
                   ).astype(jnp.float32),
        "conv_b": (s * jax.random.normal(k2, (out_channels,))).astype(jnp.float32),
        # PyTorch init is gamma=1, beta=0; perturb so the affine path is tested.
        "bn_g": (1.0 + 0.1 * jax.random.normal(k3, (out_channels,))
                 ).astype(jnp.float32),
        "bn_b": (0.1 * jax.random.normal(k4, (out_channels,))).astype(jnp.float32),
    }


# ------------------------------------ main --------------------------------------

if __name__ == "__main__":
    B, C, HW = 2, 4, 16                 # batch, in_channels, spatial
    OUT, K, STRIDE, PAD = 128, 3, 1, 1  # out_channels, kernel_size, stride, pad

    key = jax.random.PRNGKey(0)
    kx, kp = jax.random.split(key)
    x = jax.random.normal(kx, (B, C, HW, HW), dtype=jnp.float32)
    params = init_params(kp, in_channels=C, out_channels=OUT, kernel_size=K)

    out = basic_conv2d_forward(x, params, stride=STRIDE, padding=PAD)
    out = jax.block_until_ready(out)

    ref = basic_conv2d_reference(x, params, stride=STRIDE, padding=PAD)
    np.testing.assert_allclose(np.asarray(out), np.asarray(ref),
                               rtol=2e-3, atol=2e-3)
    assert out.shape == (B, OUT, HW, HW)
    print("KERNEL_OK")
</pallas_src>

<mosaic_0001>
module attributes {stable_mosaic.version = 11 : i64} {
  func.func @_conv_bn_relu_kernel(%arg0: i32, %arg1: memref<512x36xf32, #tpu.memory_space<vmem>>, %arg2: memref<36x128xf32, #tpu.memory_space<vmem>>, %arg3: memref<1x128xf32, #tpu.memory_space<vmem>>, %arg4: memref<1x128xf32, #tpu.memory_space<vmem>>, %arg5: memref<1x128xf32, #tpu.memory_space<vmem>>, %arg6: memref<512x128xf32, #tpu.memory_space<vmem>>) attributes {dimension_semantics = [#tpu.dimension_semantics<arbitrary>], iteration_bounds = array<i64: 1>, scalar_prefetch = 0 : i64, scratch_operands = 0 : i64, tpu.core_type = #tpu.core_type<tc>, window_params = [{pipeline_mode = #tpu.pipeline_mode<synchronous>, transform_indices = @transform_0, window_bounds = array<i64: 512, 36>}, {pipeline_mode = #tpu.pipeline_mode<synchronous>, transform_indices = @transform_1, window_bounds = array<i64: 36, 128>}, {pipeline_mode = #tpu.pipeline_mode<synchronous>, transform_indices = @transform_2, window_bounds = array<i64: 1, 128>}, {pipeline_mode = #tpu.pipeline_mode<synchronous>, transform_indices = @transform_3, window_bounds = array<i64: 1, 128>}, {pipeline_mode = #tpu.pipeline_mode<synchronous>, transform_indices = @transform_4, window_bounds = array<i64: 1, 128>}, {pipeline_mode = #tpu.pipeline_mode<synchronous>, transform_indices = @transform_5, window_bounds = array<i64: 512, 128>}]} {
    %c0 = arith.constant 0 : index
    %c0_0 = arith.constant 0 : index
    %0 = vector.load %arg1[%c0, %c0_0] : memref<512x36xf32, #tpu.memory_space<vmem>>, vector<512x36xf32>
    %c0_1 = arith.constant 0 : index
    %c0_2 = arith.constant 0 : index
    %1 = vector.load %arg2[%c0_1, %c0_2] : memref<36x128xf32, #tpu.memory_space<vmem>>, vector<36x128xf32>
    %cst = arith.constant dense<0.000000e+00> : vector<512x128xf32>
    %2 = tpu.matmul %0, %1, %cst {dimension_numbers = #tpu.dot_dimension_numbers<[1], [0], [0], [1], [0, 0, 1, 1], [], []>} : vector<512x36xf32>, vector<36x128xf32>, vector<512x128xf32> -> vector<512x128xf32>
    %c0_3 = arith.constant 0 : index
    %c0_4 = arith.constant 0 : index
    %3 = vector.load %arg3[%c0_3, %c0_4] : memref<1x128xf32, #tpu.memory_space<vmem>>, vector<1x128xf32>
    %4 = vector.broadcast %3 : vector<1x128xf32> to vector<512x128xf32>
    %5 = arith.addf %2, %4 : vector<512x128xf32>
    %cst_5 = arith.constant dense<0.000000e+00> : vector<128xf32>
    %6 = vector.multi_reduction <add>, %5, %cst_5 [0] : vector<512x128xf32> to vector<128xf32>
    %7 = vector.shape_cast %6 : vector<128xf32> to vector<1x128xf32>
    %cst_6 = arith.constant 0.001953125 : f32
    %8 = vector.broadcast %cst_6 : f32 to vector<1x128xf32>
    %9 = arith.mulf %7, %8 : vector<1x128xf32>
    %10 = vector.broadcast %9 : vector<1x128xf32> to vector<512x128xf32>
    %11 = arith.subf %5, %10 : vector<512x128xf32>
    %12 = arith.mulf %11, %11 : vector<512x128xf32>
    %cst_7 = arith.constant dense<0.000000e+00> : vector<128xf32>
    %13 = vector.multi_reduction <add>, %12, %cst_7 [0] : vector<512x128xf32> to vector<128xf32>
    %14 = vector.shape_cast %13 : vector<128xf32> to vector<1x128xf32>
    %cst_8 = arith.constant 0.001953125 : f32
    %15 = vector.broadcast %cst_8 : f32 to vector<1x128xf32>
    %16 = arith.mulf %14, %15 : vector<1x128xf32>
    %cst_9 = arith.constant 9.99999974E-6 : f32
    %17 = vector.broadcast %cst_9 : f32 to vector<1x128xf32>
    %18 = arith.addf %16, %17 : vector<1x128xf32>
    %19 = math.rsqrt %18 : vector<1x128xf32>
    %20 = vector.broadcast %19 : vector<1x128xf32> to vector<512x128xf32>
    %21 = arith.mulf %11, %20 : vector<512x128xf32>
    %c0_10 = arith.constant 0 : index
    %c0_11 = arith.constant 0 : index
    %22 = vector.load %arg4[%c0_10, %c0_11] : memref<1x128xf32, #tpu.memory_space<vmem>>, vector<1x128xf32>
    %23 = vector.broadcast %22 : vector<1x128xf32> to vector<512x128xf32>
    %24 = arith.mulf %21, %23 : vector<512x128xf32>
    %c0_12 = arith.constant 0 : index
    %c0_13 = arith.constant 0 : index
    %25 = vector.load %arg5[%c0_12, %c0_13] : memref<1x128xf32, #tpu.memory_space<vmem>>, vector<1x128xf32>
    %26 = vector.broadcast %25 : vector<1x128xf32> to vector<512x128xf32>
    %27 = arith.addf %24, %26 : vector<512x128xf32>
    %cst_14 = arith.constant 0.000000e+00 : f32
    %28 = vector.broadcast %cst_14 : f32 to vector<512x128xf32>
    %29 = arith.maximumf %27, %28 : vector<512x128xf32>
    %c0_15 = arith.constant 0 : index
    %c0_16 = arith.constant 0 : index
    %30 = vector.load %arg6[%c0_15, %c0_16] : memref<512x128xf32, #tpu.memory_space<vmem>>, vector<512x128xf32>
    tpu.vector_store %arg6[%c0_15, %c0_16], %29 {strides = array<i32>} : memref<512x128xf32, #tpu.memory_space<vmem>>, vector<512x128xf32>,
    return
  }
  func.func @transform_0(%arg0: i32) -> (i32, i32) {
    %c0_i32 = arith.constant 0 : i32
    %c0_i32_0 = arith.constant 0 : i32
    %c0_i32_1 = arith.constant 0 : i32
    return %c0_i32, %c0_i32_0 : i32, i32
  }
  func.func @transform_1(%arg0: i32) -> (i32, i32) {
    %c0_i32 = arith.constant 0 : i32
    %c0_i32_0 = arith.constant 0 : i32
    %c0_i32_1 = arith.constant 0 : i32
    return %c0_i32, %c0_i32_0 : i32, i32
  }
  func.func @transform_2(%arg0: i32) -> (i32, i32) {
    %c0_i32 = arith.constant 0 : i32
    %c0_i32_0 = arith.constant 0 : i32
    %c0_i32_1 = arith.constant 0 : i32
    return %c0_i32, %c0_i32_0 : i32, i32
  }
  func.func @transform_3(%arg0: i32) -> (i32, i32) {
    %c0_i32 = arith.constant 0 : i32
    %c0_i32_0 = arith.constant 0 : i32
    %c0_i32_1 = arith.constant 0 : i32
    return %c0_i32, %c0_i32_0 : i32, i32
  }
  func.func @transform_4(%arg0: i32) -> (i32, i32) {
    %c0_i32 = arith.constant 0 : i32
    %c0_i32_0 = arith.constant 0 : i32
    %c0_i32_1 = arith.constant 0 : i32
    return %c0_i32, %c0_i32_0 : i32, i32
  }
  func.func @transform_5(%arg0: i32) -> (i32, i32) {
    %c0_i32 = arith.constant 0 : i32
    %c0_i32_0 = arith.constant 0 : i32
    %c0_i32_1 = arith.constant 0 : i32
    return %c0_i32, %c0_i32_0 : i32, i32
  }
}

</mosaic_0001>

<bundles_post_ra>
// kernel: tpu_custom_call.1
= control target key start
LH: loop header
LB: loop body
LE: loop exit
PB: predicated region body
PF: predicated region fallthrough
CT: control target
= control target key end

     0   :  { %vm290_vm0 = vcmask 1043456   ;;  %vm97_vm1 = vcmask 293888   ;;  %s3335_s0 = inlined_call_operand.vmem [shape: f32[512,36], index: 0, kind: input, shape index: {}]   ;;  %s3336_s1 = inlined_call_operand.vmem [shape: f32[36,128], index: 1, kind: input, shape index: {}]   ;;  %s3337_s2 = inlined_call_operand.vmem [shape: f32[1,128], index: 2, kind: input, shape index: {}]   ;;  %s3338_s3 = inlined_call_operand.vmem [shape: f32[1,128], index: 3, kind: input, shape index: {}]   ;;  %s3339_s4 = inlined_call_operand.vmem [shape: f32[1,128], index: 4, kind: input, shape index: {}]   ;;  %s3340_s5 = inlined_call_operand.hbm [shape: f32[512,128], index: 5, kind: output, shape index: {}]  }
   0x1   :  { %v89_v0 = vld [vmem:[%s3336_s1 + $0x20] sm:$0xf]  ;;  %v88_v1 = vld [vmem:[%s3336_s1 + $0x18] sm:$0xff]  ;;  %v87_v3 = vld [vmem:[%s3336_s1 + $0x10] sm:$0xff] }
   0x2   :  { %1436 = vmatprep.subr.msk.mxu0 %vm290_vm0, %v89_v0  ;;  %v21_v2 = vld [vmem:[%s3335_s0] sm:$0xff]  ;;  %1542 = vmatprep.subr.msk.mxu1 %vm290_vm0, %v89_v0  ;;  %v86_v4 = vld [vmem:[%s3336_s1 + $0x8] sm:$0xff]  ;;  %v23_v7 = vld [vmem:[%s3335_s0 + $0x10] sm:$0xff] }
   0x3   :  { %1437 = vmatpush3.msk.msra.mxu0 %vm290_vm0, %v89_v0  ;;  %1446 = vmatprep.mubr.msk.f32.mxu0 %vm97_vm1, %v21_v2  ;;  %v85_v5 = vld [vmem:[%s3336_s1] sm:$0xff]  ;;  %v22_v6 = vld [vmem:[%s3335_s0 + $0x8] sm:$0xff]  ;;  %v24_v8 = vld [vmem:[%s3335_s0 + $0x18] sm:$0xff] }
   0x4   :  { %1438 = vmatprep.subr.mxu0 %v88_v1  ;;  %1547 = vmatpush3.msk.msra.mxu1 %vm290_vm0, %v89_v0  ;;  %v53_v9 = vld [vmem:[%s3335_s0 + $0x100] sm:$0xff]  ;;  %v54_v10 = vld [vmem:[%s3335_s0 + $0x108] sm:$0xff]  ;;  %v55_v12 = vld [vmem:[%s3335_s0 + $0x110] sm:$0xff] }
   0x5   :  { %1439 = vmatpush3.msra.mxu0 %v88_v1  ;;  %1543 = vmatprep.subr.mxu1 %v88_v1  ;;  %v25_v11 = vld [vmem:[%s3335_s0 + $0x20] sm:$0xff]  ;;  %v56_v13 = vld [vmem:[%s3335_s0 + $0x118] sm:$0xff]  ;;  %v26_v14 = vld [vmem:[%s3335_s0 + $0x28] sm:$0xff] }
   0x6   :  { %1440 = vmatprep.subr.mxu0 %v87_v3  ;;  %1548 = vmatpush3.msra.mxu1 %v88_v1  ;;  %v57_v15 = vld [vmem:[%s3335_s0 + $0x120] sm:$0xff]  ;;  %v27_v16 = vld [vmem:[%s3335_s0 + $0x30] sm:$0xff]  ;;  %v58_v17 = vld [vmem:[%s3335_s0 + $0x128] sm:$0xff] }
   0x7   :  { %1441 = vmatpush3.msra.mxu0 %v87_v3  ;;  %1544 = vmatprep.subr.mxu1 %v87_v3  ;;  %v28_v18 = vld [vmem:[%s3335_s0 + $0x38] sm:$0xff]  ;;  %v59_v19 = vld [vmem:[%s3335_s0 + $0x130] sm:$0xff]  ;;  %v29_v20 = vld [vmem:[%s3335_s0 + $0x40] sm:$0xff] }
   0x8   :  { %1442 = vmatprep.subr.mxu0 %v86_v4  ;;  %1549 = vmatpush3.msra.mxu1 %v87_v3  ;;  %v60_v21 = vld [vmem:[%s3335_s0 + $0x138] sm:$0xff] }
   0x9   :  { %1443 = vmatpush3.msra.mxu0 %v86_v4  ;;  %1545 = vmatprep.subr.mxu1 %v86_v4 }
   0xa   :  { %1444 = vmatprep.subr.mxu0 %v85_v5  ;;  %1550 = vmatpush3.msra.mxu1 %v86_v4 }
   0xb   :  { %1445 = vmatpush3.msra.mxu0 %v85_v5  ;;  %1546 = vmatprep.subr.mxu1 %v85_v5 }
   0xc   :  { %1447 = vmatmul.mubr.msk.f32.vlgmr.msra.gmra.mxu0 %vm97_vm1, %v22_v6  ;;  %1551 = vmatpush3.msra.mxu1 %v85_v5 }
   0xd   :  { %1449 = vmatprep.mubr.msk.f32.mxu0 %vm97_vm1, %v23_v7  ;;  %1494 = vmatprep.mubr.msk.f32.mxu1 %vm97_vm1, %v53_v9 }
   0xe   :  { %1495 = vmatmul.mubr.msk.f32.vlgmr.msra.gmra.mxu1 %vm97_vm1, %v54_v10 }
   0xf   :  { %1497 = vmatprep.mubr.msk.f32.mxu1 %vm97_vm1, %v55_v12 }
  0x10   :  { %1450 = vmatmul.mubr.msk.f32.gmra.mxu0 %vm97_vm1, %v24_v8 }
  0x11   :  { %1452 = vmatprep.mubr.msk.f32.mxu0 %vm97_vm1, %v25_v11 }
  0x12   :  { %1498 = vmatmul.mubr.msk.f32.gmra.mxu1 %vm97_vm1, %v56_v13 }
  0x13   :  { %1500 = vmatprep.mubr.msk.f32.mxu1 %vm97_vm1, %v57_v15 }
  0x14   :  { %1453 = vmatmul.mubr.msk.f32.gmra.mxu0 %vm97_vm1, %v26_v14 }
  0x15   :  { %1455 = vmatprep.mubr.msk.f32.mxu0 %vm97_vm1, %v27_v16 }
  0x16   :  { %1501 = vmatmul.mubr.msk.f32.gmra.mxu1 %vm97_vm1, %v58_v17 }
  0x17   :  { %1503 = vmatprep.mubr.msk.f32.mxu1 %vm97_vm1, %v59_v19 }
  0x18   :  { %1456 = vmatmul.mubr.msk.f32.gmra.mxu0 %vm97_vm1, %v28_v18 }
  0x19   :  { %10 = vsyncpa [#allocation3], 0  ;;  %1458 = vmatprep.mubr.msk.f32.mxu0 %vm97_vm1, %v29_v20  ;;  %v30_v22 = vld [vmem:[%s3335_s0 + $0x48] sm:$0xff]  ;;  %v61_v23 = vld [vmem:[%s3335_s0 + $0x140] sm:$0xff] }
  0x1a   :  { %v31_v24 = vld [vmem:[%s3335_s0 + $0x50] sm:$0xff]  ;;  %1504 = vmatmul.mubr.msk.f32.gmra.mxu1 %vm97_vm1, %v60_v21  ;;  %v62_v25 = vld [vmem:[%s3335_s0 + $0x148] sm:$0xff]  ;;  %v32_v26 = vld [vmem:[%s3335_s0 + $0x58] sm:$0xff] }
  0x1b   :  { %1506 = vmatprep.mubr.msk.f32.mxu1 %vm97_vm1, %v61_v23  ;;  %v63_v27 = vld [vmem:[%s3335_s0 + $0x150] sm:$0xff]  ;;  %v33_v28 = vld [vmem:[%s3335_s0 + $0x60] sm:$0xff]  ;;  %v64_v29 = vld [vmem:[%s3335_s0 + $0x158] sm:$0xff] }
  0x1c   :  { %1459 = vmatmul.mubr.msk.f32.gmra.mxu0 %vm97_vm1, %v30_v22  ;;  %v34_v30 = vld [vmem:[%s3335_s0 + $0x68] sm:$0xff]  ;;  %v65_v31 = vld [vmem:[%s3335_s0 + $0x160] sm:$0xff]  ;;  %v35_v32 = vld [vmem:[%s3335_s0 + $0x70] sm:$0xff] }
  0x1d   :  { %1461 = vmatprep.mubr.msk.f32.mxu0 %vm97_vm1, %v31_v24  ;;  %v66_v33 = vld [vmem:[%s3335_s0 + $0x168] sm:$0xff]  ;;  %v36_v34 = vld [vmem:[%s3335_s0 + $0x78] sm:$0xff]  ;;  %v67_v35 = vld [vmem:[%s3335_s0 + $0x170] sm:$0xff] }
  0x1e   :  { %1507 = vmatmul.mubr.msk.f32.gmra.mxu1 %vm97_vm1, %v62_v25  ;;  %v37_v36 = vld [vmem:[%s3335_s0 + $0x80] sm:$0xff]  ;;  %v68_v37 = vld [vmem:[%s3335_s0 + $0x178] sm:$0xff]  ;;  %v38_v38 = vld [vmem:[%s3335_s0 + $0x88] sm:$0xff] }
  0x1f   :  { %1509 = vmatprep.mubr.msk.f32.mxu1 %vm97_vm1, %v63_v27  ;;  %v69_v39 = vld [vmem:[%s3335_s0 + $0x180] sm:$0xff]  ;;  %v39_v40 = vld [vmem:[%s3335_s0 + $0x90] sm:$0xff]  ;;  %v70_v41 = vld [vmem:[%s3335_s0 + $0x188] sm:$0xff] }
  0x20   :  { %1462 = vmatmul.mubr.msk.f32.gmra.mxu0 %vm97_vm1, %v32_v26  ;;  %v40_v42 = vld [vmem:[%s3335_s0 + $0x98] sm:$0xff]  ;;  %v71_v43 = vld [vmem:[%s3335_s0 + $0x190] sm:$0xff]  ;;  %v41_v44 = vld [vmem:[%s3335_s0 + $0xa0] sm:$0xff] }
  0x21   :  { %1464 = vmatprep.mubr.msk.f32.mxu0 %vm97_vm1, %v33_v28  ;;  %v72_v45 = vld [vmem:[%s3335_s0 + $0x198] sm:$0xff]  ;;  %v42_v46 = vld [vmem:[%s3335_s0 + $0xa8] sm:$0xff]  ;;  %v73_v47 = vld [vmem:[%s3335_s0 + $0x1a0] sm:$0xff] }
  0x22   :  { %1510 = vmatmul.mubr.msk.f32.gmra.mxu1 %vm97_vm1, %v64_v29  ;;  %v43_v48 = vld [vmem:[%s3335_s0 + $0xb0] sm:$0xff]  ;;  %v74_v49 = vld [vmem:[%s3335_s0 + $0x1a8] sm:$0xff]  ;;  %v44_v50 = vld [vmem:[%s3335_s0 + $0xb8] sm:$0xff] }
  0x23   :  { %1512 = vmatprep.mubr.msk.f32.mxu1 %vm97_vm1, %v65_v31  ;;  %v75_v51 = vld [vmem:[%s3335_s0 + $0x1b0] sm:$0xff]  ;;  %v45_v52 = vld [vmem:[%s3335_s0 + $0xc0] sm:$0xff]  ;;  %v76_v53 = vld [vmem:[%s3335_s0 + $0x1b8] sm:$0xff] }
  0x24   :  { %1465 = vmatmul.mubr.msk.f32.gmra.mxu0 %vm97_vm1, %v34_v30  ;;  %v46_v54 = vld [vmem:[%s3335_s0 + $0xc8] sm:$0xff]  ;;  %v77_v55 = vld [vmem:[%s3335_s0 + $0x1c0] sm:$0xff]  ;;  %v47_v56 = vld [vmem:[%s3335_s0 + $0xd0] sm:$0xff] }
  0x25   :  { %1467 = vmatprep.mubr.msk.f32.mxu0 %vm97_vm1, %v35_v32  ;;  %v78_v57 = vld [vmem:[%s3335_s0 + $0x1c8] sm:$0xff]  ;;  %v48_v58 = vld [vmem:[%s3335_s0 + $0xd8] sm:$0xff]  ;;  %v79_v59 = vld [vmem:[%s3335_s0 + $0x1d0] sm:$0xff] }
  0x26   :  { %1513 = vmatmul.mubr.msk.f32.gmra.mxu1 %vm97_vm1, %v66_v33  ;;  %v49_v60 = vld [vmem:[%s3335_s0 + $0xe0] sm:$0xff]  ;;  %v80_v61 = vld [vmem:[%s3335_s0 + $0x1d8] sm:$0xff]  ;;  %v50_v62 = vld [vmem:[%s3335_s0 + $0xe8] sm:$0xff] }
  0x27   :  { %1515 = vmatprep.mubr.msk.f32.mxu1 %vm97_vm1, %v67_v35  ;;  %v81_v63 = vld [vmem:[%s3335_s0 + $0x1e0] sm:$0xff]  ;;  %v51_v0 = vld [vmem:[%s3335_s0 + $0xf0] sm:$0xff]  ;;  %v82_v1 = vld [vmem:[%s3335_s0 + $0x1e8] sm:$0xff] }
  0x28   :  { %1468 = vmatmul.mubr.msk.f32.gmra.mxu0 %vm97_vm1, %v36_v34  ;;  %v52_v2 = vld [vmem:[%s3335_s0 + $0xf8] sm:$0xff]  ;;  %v83_v3 = vld [vmem:[%s3335_s0 + $0x1f0] sm:$0xff]  ;;  %v1886_v6 = vld [vmem:[%s3337_s2] ss:$0 sm:$0xff] }
  0x29   :  { %1470 = vmatprep.mubr.msk.f32.mxu0 %vm97_vm1, %v37_v36  ;;  %v84_v4 = vld [vmem:[%s3335_s0 + $0x1f8] sm:$0xff] }
  0x2a   :  { %1516 = vmatmul.mubr.msk.f32.gmra.mxu1 %vm97_vm1, %v68_v37 }
  0x2b   :  { %1518 = vmatprep.mubr.msk.f32.mxu1 %vm97_vm1, %v69_v39 }
  0x2c   :  { %1471 = vmatmul.mubr.msk.f32.gmra.mxu0 %vm97_vm1, %v38_v38 }
  0x2d   :  { %1473 = vmatprep.mubr.msk.f32.mxu0 %vm97_vm1, %v39_v40 }
  0x2e   :  { %1519 = vmatmul.mubr.msk.f32.gmra.mxu1 %vm97_vm1, %v70_v41 }
  0x2f   :  { %1521 = vmatprep.mubr.msk.f32.mxu1 %vm97_vm1, %v71_v43 }
  0x30   :  { %1474 = vmatmul.mubr.msk.f32.gmra.mxu0 %vm97_vm1, %v40_v42 }
  0x31   :  { %1476 = vmatprep.mubr.msk.f32.mxu0 %vm97_vm1, %v41_v44 }
  0x32   :  { %1522 = vmatmul.mubr.msk.f32.gmra.mxu1 %vm97_vm1, %v72_v45 }
  0x33   :  { %1524 = vmatprep.mubr.msk.f32.mxu1 %vm97_vm1, %v73_v47 }
  0x34   :  { %1477 = vmatmul.mubr.msk.f32.gmra.mxu0 %vm97_vm1, %v42_v46 }
  0x35   :  { %1479 = vmatprep.mubr.msk.f32.mxu0 %vm97_vm1, %v43_v48 }
  0x36   :  { %1525 = vmatmul.mubr.msk.f32.gmra.mxu1 %vm97_vm1, %v74_v49 }
  0x37   :  { %1527 = vmatprep.mubr.msk.f32.mxu1 %vm97_vm1, %v75_v51 }
  0x38   :  { %1480 = vmatmul.mubr.msk.f32.gmra.mxu0 %vm97_vm1, %v44_v50 }
  0x39   :  { %1482 = vmatprep.mubr.msk.f32.mxu0 %vm97_vm1, %v45_v52 }
  0x3a   :  { %1528 = vmatmul.mubr.msk.f32.gmra.mxu1 %vm97_vm1, %v76_v53 }
  0x3b   :  { %1530 = vmatprep.mubr.msk.f32.mxu1 %vm97_vm1, %v77_v55 }
  0x3c   :  { %1483 = vmatmul.mubr.msk.f32.gmra.mxu0 %vm97_vm1, %v46_v54 }
  0x3d   :  { %1485 = vmatprep.mubr.msk.f32.mxu0 %vm97_vm1, %v47_v56 }
  0x3e   :  { %1531 = vmatmul.mubr.msk.f32.gmra.mxu1 %vm97_vm1, %v78_v57 }
  0x3f   :  { %1533 = vmatprep.mubr.msk.f32.mxu1 %vm97_vm1, %v79_v59 }
  0x40   :  { %1486 = vmatmul.mubr.msk.f32.gmra.mxu0 %vm97_vm1, %v48_v58 }
  0x41   :  { %1488 = vmatprep.mubr.msk.f32.mxu0 %vm97_vm1, %v49_v60 }
  0x42   :  { %1534 = vmatmul.mubr.msk.f32.gmra.mxu1 %vm97_vm1, %v80_v61 }
  0x43   :  { %1536 = vmatprep.mubr.msk.f32.mxu1 %vm97_vm1, %v81_v63 }
  0x44   :  { %1489 = vmatmul.mubr.msk.f32.gmra.mxu0 %vm97_vm1, %v50_v62 }
  0x45   :  { %1491 = vmatprep.mubr.msk.f32.mxu0 %vm97_vm1, %v51_v0 }
  0x46   :  { %1537 = vmatmul.mubr.msk.f32.gmra.mxu1 %vm97_vm1, %v82_v1 }
  0x47   :  { %1539 = vmatprep.mubr.msk.f32.mxu1 %vm97_vm1, %v83_v3 }
  0x48   :  { %1492 = vmatmul.mubr.msk.f32.gmra.mxu0 %vm97_vm1, %v52_v2 }
  0x4a   :  { %1540 = vmatmul.mubr.msk.f32.gmra.mxu1 %vm97_vm1, %v84_v4 }
  0xcc   :  { %v1448_v5 = vpop.f32.mrf.mxu0 }
  0xcd   :  { %v1894_v11 = vadd.f32 %v1448_v5, %v1886_v6 }
  0xce   :  { %v360_v7 = vpop.f32.mrf.mxu0  ;;  %v1891_v9 = vpop.f32.mrf.mxu1 }
  0xcf   :  { %v1889_v8 = vadd.f32 %v1886_v6, %v360_v7 }
  0xd0   :  { %v1451_v10 = vpop.f32.mrf.mxu0  ;;  %v1896_v12 = vpop.f32.mrf.mxu1 }
  0xd1   :  { %v679_v14 = vadd.f32 %v1894_v11, %v1889_v8  ;;  %v1906_v18 = vadd.f32 %v1451_v10, %v1886_v6 }
  0xd2   :  { %v370_v13 = vpop.f32.mrf.mxu0  ;;  %v1903_v17 = vpop.f32.mrf.mxu1 }
  0xd3   :  { %v1901_v15 = vadd.f32 %v1886_v6, %v370_v13 }
  0xd4   :  { %v1454_v16 = vpop.f32.mrf.mxu0  ;;  %v1913_v24 = vpop.f32.mrf.mxu1 }
  0xd5   :  { %v680_v19 = vadd.f32 %v679_v14, %v1901_v15  ;;  %v1916_v25 = vadd.f32 %v1454_v16, %v1886_v6 }
  0xd6   :  { %v380_v20 = vpop.f32.mrf.mxu0  ;;  %v1923_v31 = vpop.f32.mrf.mxu1 }
  0xd7   :  { %v681_v21 = vadd.f32 %v680_v19, %v1906_v18  ;;  %v1911_v22 = vadd.f32 %v1886_v6, %v380_v20 }
  0xd8   :  { %v1457_v23 = vpop.f32.mrf.mxu0  ;;  %v1933_v38 = vpop.f32.mrf.mxu1 }
  0xd9   :  { %v682_v26 = vadd.f32 %v681_v21, %v1911_v22  ;;  %v1926_v32 = vadd.f32 %v1457_v23, %v1886_v6 }
  0xda   :  { %v390_v27 = vpop.f32.mrf.mxu0  ;;  %v1943_v45 = vpop.f32.mrf.mxu1 }
  0xdb   :  { %v1920_v28 = vadd.f32 %v1886_v6, %v390_v27  ;;  %v683_v29 = vadd.f32 %v682_v26, %v1916_v25 }
  0xdc   :  { %v1460_v30 = vpop.f32.mrf.mxu0  ;;  %v1953_v52 = vpop.f32.mrf.mxu1 }
  0xdd   :  { %v684_v33 = vadd.f32 %v683_v29, %v1920_v28  ;;  %v1936_v39 = vadd.f32 %v1460_v30, %v1886_v6 }
  0xde   :  { %v400_v34 = vpop.f32.mrf.mxu0  ;;  %v1963_v59 = vpop.f32.mrf.mxu1 }
  0xdf   :  { %v1930_v35 = vadd.f32 %v1886_v6, %v400_v34  ;;  %v685_v36 = vadd.f32 %v684_v33, %v1926_v32 }
  0xe0   :  { %v1463_v37 = vpop.f32.mrf.mxu0  ;;  %v1973_v2 = vpop.f32.mrf.mxu1 }
  0xe1   :  { %v686_v40 = vadd.f32 %v685_v36, %v1930_v35  ;;  %v1946_v46 = vadd.f32 %v1463_v37, %v1886_v6 }
  0xe2   :  { %v410_v41 = vpop.f32.mrf.mxu0  ;;  %v1983_v14 = vpop.f32.mrf.mxu1 }
  0xe3   :  { %v1940_v42 = vadd.f32 %v1886_v6, %v410_v41  ;;  %v687_v43 = vadd.f32 %v686_v40, %v1936_v39 }
  0xe4   :  { %v1466_v44 = vpop.f32.mrf.mxu0  ;;  %v570_v27 = vpop.f32.mrf.mxu1 }
  0xe5   :  { %v688_v47 = vadd.f32 %v687_v43, %v1940_v42  ;;  %v1956_v53 = vadd.f32 %v1466_v44, %v1886_v6 }
  0xe6   :  { %v420_v48 = vpop.f32.mrf.mxu0  ;;  %v2001_v40 = vpop.f32.mrf.mxu1 }
  0xe7   :  { %v1950_v49 = vadd.f32 %v1886_v6, %v420_v48  ;;  %v689_v50 = vadd.f32 %v688_v47, %v1946_v46 }
  0xe8   :  { %v1469_v51 = vpop.f32.mrf.mxu0 }
  0xe9   :  { %v690_v54 = vadd.f32 %v689_v50, %v1950_v49  ;;  %v1966_v60 = vadd.f32 %v1469_v51, %v1886_v6  ;;  %v580_v51 = vpop.f32.mrf.mxu1 }
  0xea   :  { %v430_v55 = vpop.f32.mrf.mxu0 }
  0xeb   :  { %v1960_v56 = vadd.f32 %v1886_v6, %v430_v55  ;;  %v691_v57 = vadd.f32 %v690_v54, %v1956_v53 }
  0xec   :  { %v1472_v58 = vpop.f32.mrf.mxu0 }
  0xed   :  { %v692_v61 = vadd.f32 %v691_v57, %v1960_v56  ;;  %v1976_v3 = vadd.f32 %v1472_v58, %v1886_v6 }
  0xee   :  { %v440_v62 = vpop.f32.mrf.mxu0 }
  0xef   :  { %v1970_v63 = vadd.f32 %v1886_v6, %v440_v62  ;;  %v693_v0 = vadd.f32 %v692_v61, %v1966_v60 }
  0xf0   :  { %v1475_v1 = vpop.f32.mrf.mxu0 }
  0xf1   :  { %v694_v4 = vadd.f32 %v693_v0, %v1970_v63  ;;  %v1986_v16 = vadd.f32 %v1475_v1, %v1886_v6  ;;  %v1517_v0 = vpop.f32.mrf.mxu1 }
  0xf2   :  { %v450_v5 = vpop.f32.mrf.mxu0 }
  0xf3   :  { %v1980_v7 = vadd.f32 %v1886_v6, %v450_v5  ;;  %v695_v10 = vadd.f32 %v694_v4, %v1976_v3 }
  0xf4   :  { %v1478_v13 = vpop.f32.mrf.mxu0 }
  0xf5   :  { %v696_v19 = vadd.f32 %v695_v10, %v1980_v7  ;;  %v1994_v29 = vadd.f32 %v1478_v13, %v1886_v6 }
  0xf6   :  { %v460_v20 = vpop.f32.mrf.mxu0 }
  0xf7   :  { %v1990_v21 = vadd.f32 %v1886_v6, %v460_v20  ;;  %v697_v23 = vadd.f32 %v696_v19, %v1986_v16  ;;  %v590_v20 = vpop.f32.mrf.mxu1 }
  0xf8   :  { %v1481_v26 = vpop.f32.mrf.mxu0 }
  0xf9   :  { %v698_v30 = vadd.f32 %v697_v23, %v1990_v21  ;;  %v2004_v41 = vadd.f32 %v1481_v26, %v1886_v6 }
  0xfa   :  { %v470_v33 = vpop.f32.mrf.mxu0 }
  0xfb   :  { %v1998_v34 = vadd.f32 %v1886_v6, %v470_v33  ;;  %v699_v36 = vadd.f32 %v698_v30, %v1994_v29 }
  0xfc   :  { %v1484_v37 = vpop.f32.mrf.mxu0 }
  0xfd   :  { %v700_v43 = vadd.f32 %v699_v36, %v1998_v34  ;;  %v2012_v54 = vadd.f32 %v1484_v37, %v1886_v6  ;;  %v1520_v37 = vpop.f32.mrf.mxu1 }
  0xfe   :  { %v480_v44 = vpop.f32.mrf.mxu0 }
  0xff   :  { %v2008_v47 = vadd.f32 %v1886_v6, %v480_v44  ;;  %v701_v48 = vadd.f32 %v700_v43, %v2004_v41 }
 0x100   :  { %v1487_v50 = vpop.f32.mrf.mxu0 }
 0x101   :  { %v702_v55 = vadd.f32 %v701_v48, %v2008_v47  ;;  %v2020_v1 = vadd.f32 %v1487_v50, %v1886_v6  ;;  %v2041_v48 = vadd.f32 %v1886_v6, %v1896_v12  ;;  %v2056_v12 = vadd.f32 %v1903_v17, %v1886_v6 }
 0x102   :  { %v490_v57 = vpop.f32.mrf.mxu0 }
 0x103   :  { %v2016_v58 = vadd.f32 %v1886_v6, %v490_v57  ;;  %v703_v61 = vadd.f32 %v702_v55, %v2012_v54  ;;  %3379 = vst [vmem:[#allocation5_spill] sm:$0xff] %v2020_v1  ;;  %3384 = vst [vmem:[#allocation10_spill] sm:$0xff] %v2041_v48  ;;  %v600_v55 = vpop.f32.mrf.mxu1  ;;  %v2046_v57 = vadd.f32 %v1891_v9, %v1886_v6 }
 0x104   :  { %v1490_v62 = vpop.f32.mrf.mxu0  ;;  %3387 = vst [vmem:[#allocation13_spill] sm:$0xff] %v2056_v12 }
 0x105   :  { %v704_v4 = vadd.f32 %v703_v61, %v2016_v58  ;;  %v2028_v23 = vadd.f32 %v1490_v62, %v1886_v6  ;;  %3385 = vst [vmem:[#allocation11_spill] sm:$0xff] %v2046_v57  ;;  %v2051_v62 = vadd.f32 %v1886_v6, %v1913_v24  ;;  %v2066_v24 = vadd.f32 %v1923_v31, %v1886_v6 }
 0x106   :  { %v500_v5 = vpop.f32.mrf.mxu0 }
 0x107   :  { %v2024_v10 = vadd.f32 %v1886_v6, %v500_v5  ;;  %v705_v13 = vadd.f32 %v704_v4, %v2020_v1  ;;  %3381 = vst [vmem:[#allocation7_spill] sm:$0xff] %v2028_v23  ;;  %3386 = vst [vmem:[#allocation12_spill] sm:$0xff] %v2051_v62  ;;  %v1523_v5 = vpop.f32.mrf.mxu1 }
 0x108   :  { %v1493_v19 = vpop.f32.mrf.mxu0  ;;  %3389 = vst [vmem:[#allocation15_spill] sm:$0xff] %v2066_v24 }
 0x109   :  { %3380 = vst [vmem:[#allocation6_spill] sm:$0xff] %v2024_v10  ;;  %v706_v26 = vadd.f32 %v705_v13, %v2024_v10  ;;  %v2036_v43 = vadd.f32 %v1493_v19, %v1886_v6  ;;  %v2061_v19 = vadd.f32 %v1886_v6, %v1933_v38  ;;  %v2076_v38 = vadd.f32 %v1943_v45, %v1886_v6 }
 0x10a   :  { %v510_v30 = vpop.f32.mrf.mxu0 }
 0x10b   :  { %v2032_v33 = vadd.f32 %v1886_v6, %v510_v30  ;;  %v707_v36 = vadd.f32 %v706_v26, %v2028_v23  ;;  %3383 = vst [vmem:[#allocation9_spill] sm:$0xff] %v2036_v43  ;;  %3388 = vst [vmem:[#allocation14_spill] sm:$0xff] %v2061_v19  ;;  %v610_v26 = vpop.f32.mrf.mxu1 }
 0x10c   :  { %3391 = vst [vmem:[#allocation17_spill] sm:$0xff] %v2076_v38 }
 0x10d   :  { %3382 = vst [vmem:[#allocation8_spill] sm:$0xff] %v2032_v33  ;;  %v708_v44 = vadd.f32 %v707_v36, %v2032_v33  ;;  %v2071_v36 = vadd.f32 %v1886_v6, %v1953_v52  ;;  %v2086_v52 = vadd.f32 %v1963_v59, %v1886_v6 }
 0x10f   :  { %v709_v50 = vadd.f32 %v708_v44, %v2036_v43  ;;  %3390 = vst [vmem:[#allocation16_spill] sm:$0xff] %v2071_v36  ;;  %v1526_v44 = vpop.f32.mrf.mxu1  ;;  %3393 = vst [vmem:[#allocation19_spill] sm:$0xff] %v2086_v52 }
 0x111   :  { %v710_v61 = vadd.f32 %v709_v50, %v2041_v48 }
 0x113   :  { %v711_v4 = vadd.f32 %v710_v61, %v2046_v57  ;;  %v2081_v61 = vadd.f32 %v1886_v6, %v1973_v2 }
 0x115   :  { %v712_v13 = vadd.f32 %v711_v4, %v2051_v62  ;;  %3392 = vst [vmem:[#allocation18_spill] sm:$0xff] %v2081_v61  ;;  %v620_v4 = vpop.f32.mrf.mxu1 }
 0x117   :  { %v713_v9 = vadd.f32 %v712_v13, %v2056_v12 }
 0x119   :  { %v714_v30 = vadd.f32 %v713_v9, %v2061_v19  ;;  %v2090_v9 = vadd.f32 %v1886_v6, %v570_v27 }
 0x11b   :  { %v715_v17 = vadd.f32 %v714_v30, %v2066_v24  ;;  %3394 = vst [vmem:[#allocation20_spill] sm:$0xff] %v2090_v9  ;;  %v1529_v30 = vpop.f32.mrf.mxu1  ;;  %v606_v24 = vadd.f32 %v1520_v37, %v1886_v6 }
 0x11c   :  { %v636_v37 = vadd.f32 %v1529_v30, %v1886_v6 }
 0x11d   :  { %v716_v50 = vadd.f32 %v715_v17, %v2071_v36  ;;  %v2095_v17 = vadd.f32 %v1983_v14, %v1886_v6  ;;  %v596_v14 = vadd.f32 %v1517_v0, %v1886_v6  ;;  %v626_v0 = vadd.f32 %v1526_v44, %v1886_v6 }
 0x11f   :  { %v717_v31 = vadd.f32 %v716_v50, %v2076_v38  ;;  %3395 = vst [vmem:[#allocation21_spill] sm:$0xff] %v2095_v17  ;;  %v2099_v50 = vadd.f32 %v1886_v6, %v580_v51  ;;  %v630_v38 = vpop.f32.mrf.mxu1 }
 0x121   :  { %v718_v13 = vadd.f32 %v717_v31, %v2081_v61  ;;  %3396 = vst [vmem:[#allocation22_spill] sm:$0xff] %v2099_v50  ;;  %v586_v31 = vadd.f32 %v2001_v40, %v1886_v6  ;;  %v1532_v61 = vpop.f32.mrf.mxu1 }
 0x123   :  { %v719_v45 = vadd.f32 %v718_v13, %v2086_v52  ;;  %v591_v13 = vadd.f32 %v1886_v6, %v590_v20  ;;  %v640_v51 = vpop.f32.mrf.mxu1  ;;  %v621_v20 = vadd.f32 %v1886_v6, %v620_v4 }
 0x125   :  { %v720_v2 = vadd.f32 %v719_v45, %v2090_v9  ;;  %v601_v45 = vadd.f32 %v1886_v6, %v600_v55  ;;  %v1535_v40 = vpop.f32.mrf.mxu1  ;;  %v631_v55 = vadd.f32 %v1886_v6, %v630_v38 }
 0x126   :  { %v656_v44 = vadd.f32 %v1535_v40, %v1886_v6 }
 0x127   :  { %v721_v59 = vadd.f32 %v720_v2, %v2095_v17  ;;  %v611_v17 = vadd.f32 %v1886_v6, %v610_v26  ;;  %v650_v12 = vpop.f32.mrf.mxu1  ;;  %v641_v26 = vadd.f32 %v1886_v6, %v640_v51 }
 0x128   :  { %v651_v4 = vadd.f32 %v1886_v6, %v650_v12 }
 0x129   :  { %v722_v27 = vadd.f32 %v721_v59, %v2099_v50  ;;  %v616_v59 = vadd.f32 %v1523_v5, %v1886_v6  ;;  %v1538_v62 = vpop.f32.mrf.mxu1  ;;  %v646_v5 = vadd.f32 %v1532_v61, %v1886_v6 }
 0x12a   :  { %v666_v30 = vadd.f32 %v1538_v62, %v1886_v6 }
 0x12b   :  { %v723_v52 = vadd.f32 %v722_v27, %v586_v31  ;;  %v660_v57 = vpop.f32.mrf.mxu1 }
 0x12c   :  { %v661_v38 = vadd.f32 %v1886_v6, %v660_v57 }
 0x12d   :  { %v724_v36 = vadd.f32 %v723_v52, %v591_v13  ;;  %v1541_v48 = vpop.f32.mrf.mxu1 }
 0x12e   :  { %v676_v61 = vadd.f32 %v1541_v48, %v1886_v6 }
 0x12f   :  { %v725_v9 = vadd.f32 %v724_v36, %v596_v14  ;;  %v670_v43 = vpop.f32.mrf.mxu1 }
 0x130   :  { %v671_v51 = vadd.f32 %v1886_v6, %v670_v43 }
 0x131   :  { %v726_v2 = vadd.f32 %v725_v9, %v601_v45 }
 0x133   :  { %v727_v19 = vadd.f32 %v726_v2, %v606_v24 }
 0x135   :  { %v728_v50 = vadd.f32 %v727_v19, %v611_v17 }
 0x137   :  { %v729_v27 = vadd.f32 %v728_v50, %v616_v59 }
 0x139   :  { %v730_v52 = vadd.f32 %v729_v27, %v621_v20 }
 0x13b   :  { %v731_v36 = vadd.f32 %v730_v52, %v626_v0 }
 0x13d   :  { %v732_v9 = vadd.f32 %v731_v36, %v631_v55 }
 0x13f   :  { %v733_v2 = vadd.f32 %v732_v9, %v636_v37 }
 0x141   :  { %v734_v19 = vadd.f32 %v733_v2, %v641_v26 }
 0x143   :  { %v735_v50 = vadd.f32 %v734_v19, %v646_v5 }
 0x145   :  { %v736_v27 = vadd.f32 %v735_v50, %v651_v4 }
 0x147   :  { %v737_v52 = vadd.f32 %v736_v27, %v656_v44 }
 0x149   :  { %v738_v36 = vadd.f32 %v737_v52, %v661_v38 }
 0x14b   :  { %v739_v9 = vadd.f32 %v738_v36, %v666_v30 }
 0x14d   :  { %v740_v2 = vadd.f32 %v739_v9, %v671_v51 }
 0x14f   :  { %v741_v33 = vadd.f32 %v740_v2, %v676_v61 }
 0x151   :  { %v742_v12 = vrot.slane %v741_v33, 4 }
 0x153   :  { %v743_v19 = vadd.f32 %v742_v12, %v741_v33 }
 0x155   :  { %v744_v23 = vrot.slane %v743_v19, 2 }
 0x157   :  { %v745_v10 = vadd.f32 %v744_v23, %v743_v19 }
 0x159   :  { %v746_v40 = vrot.slane %v745_v10, 1 }
 0x15b   :  { %v747_v50 = vadd.f32 %v746_v40, %v745_v10 }
 0x15d   :  { %v2123_v1 = vmul.f32 0.001953125, %v747_v50 }
 0x15f   :  { %v2126_v57 = vsub.f32 %v586_v31, %v2123_v1  ;;  %v2129_v62 = vsub.f32 %v591_v13, %v2123_v1  ;;  %v2132_v43 = vsub.f32 %v596_v14, %v2123_v1  ;;  %v2135_v6 = vsub.f32 %v601_v45, %v2123_v1 }
 0x160   :  { %v2138_v33 = vsub.f32 %v606_v24, %v2123_v1  ;;  %v2141_v23 = vsub.f32 %v611_v17, %v2123_v1  ;;  %v2144_v10 = vsub.f32 %v616_v59, %v2123_v1  ;;  %v2147_v48 = vsub.f32 %v621_v20, %v2123_v1 }
 0x161   :  { %v2150_v31 = vsub.f32 %v626_v0, %v2123_v1  ;;  %v2153_v13 = vsub.f32 %v631_v55, %v2123_v1  ;;  %v2156_v14 = vsub.f32 %v636_v37, %v2123_v1  ;;  %v2159_v24 = vsub.f32 %v641_v26, %v2123_v1 }
 0x162   :  { %v2162_v17 = vsub.f32 %v646_v5, %v2123_v1  ;;  %v2165_v45 = vsub.f32 %v651_v4, %v2123_v1  ;;  %v2168_v59 = vsub.f32 %v656_v44, %v2123_v1  ;;  %v2171_v20 = vsub.f32 %v661_v38, %v2123_v1 }
 0x163   :  { %v2174_v0 = vsub.f32 %v666_v30, %v2123_v1  ;;  %v2177_v55 = vsub.f32 %v671_v51, %v2123_v1  ;;  %v2180_v37 = vsub.f32 %v676_v61, %v2123_v1  ;;  %v2184_v26 = vsub.f32 %v1889_v8, %v2123_v1 }
 0x164   :  { %3397 = vst [vmem:[#allocation23_spill] sm:$0xff] %v2162_v17  ;;  %3398 = vst [vmem:[#allocation24_spill] sm:$0xff] %v2165_v45  ;;  %v2188_v5 = vsub.f32 %v1894_v11, %v2123_v1  ;;  %v2192_v4 = vsub.f32 %v1901_v15, %v2123_v1  ;;  %v2200_v38 = vsub.f32 %v1906_v18, %v2123_v1 }
 0x165   :  { %3399 = vst [vmem:[#allocation25_spill] sm:$0xff] %v2168_v59  ;;  %3400 = vst [vmem:[#allocation26_spill] sm:$0xff] %v2171_v20  ;;  %v813_v44 = vmul.f32 %v2184_v26, %v2184_v26  ;;  %v2204_v8 = vsub.f32 %v1911_v22, %v2123_v1  ;;  %v2210_v15 = vsub.f32 %v1916_v25, %v2123_v1 }
 0x166   :  { %3401 = vst [vmem:[#allocation27_spill] sm:$0xff] %v2174_v0  ;;  %v814_v27 = vmul.f32 %v2188_v5, %v2188_v5  ;;  %v815_v11 = vmul.f32 %v2192_v4, %v2192_v4  ;;  %v816_v30 = vmul.f32 %v2200_v38, %v2200_v38  ;;  %v2216_v18 = vsub.f32 %v1920_v28, %v2123_v1 }
 0x167   :  { %v817_v22 = vmul.f32 %v2204_v8, %v2204_v8  ;;  %v2222_v9 = vsub.f32 %v1926_v32, %v2123_v1  ;;  %v818_v25 = vmul.f32 %v2210_v15, %v2210_v15  ;;  %v2228_v2 = vsub.f32 %v1930_v35, %v2123_v1 }
 0x168   :  { %v877_v52 = vadd.f32 %v814_v27, %v813_v44  ;;  %v819_v28 = vmul.f32 %v2216_v18, %v2216_v18  ;;  %v2234_v19 = vsub.f32 %v1936_v39, %v2123_v1  ;;  %v2240_v50 = vsub.f32 %v1940_v42, %v2123_v1 }
 0x169   :  { %v820_v32 = vmul.f32 %v2222_v9, %v2222_v9  ;;  %v821_v35 = vmul.f32 %v2228_v2, %v2228_v2  ;;  %v2246_v27 = vsub.f32 %v1946_v46, %v2123_v1 }
 0x16a   :  { %v878_v36 = vadd.f32 %v877_v52, %v815_v11  ;;  %v822_v39 = vmul.f32 %v2234_v19, %v2234_v19  ;;  %v2252_v52 = vsub.f32 %v1950_v49, %v2123_v1  ;;  %v823_v42 = vmul.f32 %v2240_v50, %v2240_v50 }
 0x16b   :  { %v824_v46 = vmul.f32 %v2246_v27, %v2246_v27 }
 0x16c   :  { %v879_v51 = vadd.f32 %v878_v36, %v816_v30  ;;  %v2258_v36 = vsub.f32 %v1956_v53, %v2123_v1  ;;  %v825_v49 = vmul.f32 %v2252_v52, %v2252_v52 }
 0x16e   :  { %v880_v61 = vadd.f32 %v879_v51, %v817_v22  ;;  %v2264_v51 = vsub.f32 %v1960_v56, %v2123_v1  ;;  %v826_v53 = vmul.f32 %v2258_v36, %v2258_v36 }
 0x170   :  { %v881_v12 = vadd.f32 %v880_v61, %v818_v25  ;;  %v2270_v61 = vsub.f32 %v1966_v60, %v2123_v1  ;;  %v827_v56 = vmul.f32 %v2264_v51, %v2264_v51 }
 0x172   :  { %v882_v40 = vadd.f32 %v881_v12, %v819_v28  ;;  %v2276_v12 = vsub.f32 %v1970_v63, %v2123_v1  ;;  %v828_v60 = vmul.f32 %v2270_v61, %v2270_v61 }
 0x174   :  { %v883_v44 = vadd.f32 %v882_v40, %v820_v32  ;;  %v2282_v40 = vsub.f32 %v1976_v3, %v2123_v1  ;;  %v829_v63 = vmul.f32 %v2276_v12, %v2276_v12 }
 0x176   :  { %v884_v11 = vadd.f32 %v883_v44, %v821_v35  ;;  %v2288_v44 = vsub.f32 %v1980_v7, %v2123_v1  ;;  %v830_v3 = vmul.f32 %v2282_v40, %v2282_v40 }
 0x178   :  { %v885_v30 = vadd.f32 %v884_v11, %v822_v39  ;;  %v2294_v11 = vsub.f32 %v1986_v16, %v2123_v1  ;;  %v831_v7 = vmul.f32 %v2288_v44, %v2288_v44 }
 0x17a   :  { %v886_v22 = vadd.f32 %v885_v30, %v823_v42  ;;  %v2300_v30 = vsub.f32 %v1990_v21, %v2123_v1  ;;  %v832_v16 = vmul.f32 %v2294_v11, %v2294_v11 }
 0x17c   :  { %v887_v25 = vadd.f32 %v886_v22, %v824_v46  ;;  %v2306_v22 = vsub.f32 %v1994_v29, %v2123_v1  ;;  %v833_v21 = vmul.f32 %v2300_v30, %v2300_v30 }
 0x17e   :  { %v888_v28 = vadd.f32 %v887_v25, %v825_v49  ;;  %v2312_v25 = vsub.f32 %v1998_v34, %v2123_v1  ;;  %v834_v29 = vmul.f32 %v2306_v22, %v2306_v22 }
 0x180   :  { %v889_v32 = vadd.f32 %v888_v28, %v826_v53  ;;  %v2318_v28 = vsub.f32 %v2004_v41, %v2123_v1  ;;  %v835_v34 = vmul.f32 %v2312_v25, %v2312_v25 }
 0x182   :  { %v890_v35 = vadd.f32 %v889_v32, %v827_v56  ;;  %v2324_v32 = vsub.f32 %v2008_v47, %v2123_v1  ;;  %v836_v41 = vmul.f32 %v2318_v28, %v2318_v28 }
 0x184   :  { %v891_v39 = vadd.f32 %v890_v35, %v828_v60  ;;  %v2330_v35 = vsub.f32 %v2012_v54, %v2123_v1  ;;  %v837_v47 = vmul.f32 %v2324_v32, %v2324_v32 }
 0x186   :  { %v892_v42 = vadd.f32 %v891_v39, %v829_v63  ;;  %v2336_v39 = vsub.f32 %v2016_v58, %v2123_v1  ;;  %v838_v54 = vmul.f32 %v2330_v35, %v2330_v35 }
 0x188   :  { %v893_v46 = vadd.f32 %v892_v42, %v830_v3  ;;  %v3402_v42 = vld [vmem:[#allocation5_spill] sm:$0xff]  ;;  %v839_v58 = vmul.f32 %v2336_v39, %v2336_v39 }
 0x18a   :  { %v894_v49 = vadd.f32 %v893_v46, %v831_v7  ;;  %v2342_v7 = vsub.f32 %v3402_v42, %v2123_v1 }
 0x18c   :  { %v895_v53 = vadd.f32 %v894_v49, %v832_v16  ;;  %v3403_v16 = vld [vmem:[#allocation6_spill] sm:$0xff] }
 0x18d   :  { %v2348_v49 = vsub.f32 %v3403_v16, %v2123_v1  ;;  %v3411_v16 = vld [vmem:[#allocation10_spill] sm:$0xff] }
 0x18e   :  { %v896_v56 = vadd.f32 %v895_v53, %v833_v21  ;;  %v3405_v53 = vld [vmem:[#allocation7_spill] sm:$0xff] }
 0x18f   :  { %3404 = vst [vmem:[#allocation5_spill] sm:$0xff] %v2348_v49 }
 0x190   :  { %v897_v60 = vadd.f32 %v896_v56, %v834_v29  ;;  %v2354_v29 = vsub.f32 %v3405_v53, %v2123_v1  ;;  %v840_v56 = vmul.f32 %v2342_v7, %v2342_v7  ;;  %v2372_v53 = vsub.f32 %v3411_v16, %v2123_v1  ;;  %v3417_v16 = vld [vmem:[#allocation13_spill] sm:$0xff] }
 0x192   :  { %v898_v63 = vadd.f32 %v897_v60, %v835_v34  ;;  %3406 = vst [vmem:[#allocation6_spill] sm:$0xff] %v2354_v29  ;;  %v3407_v60 = vld [vmem:[#allocation8_spill] sm:$0xff] }
 0x194   :  { %v899_v3 = vadd.f32 %v898_v63, %v836_v41  ;;  %v2360_v41 = vsub.f32 %v3407_v60, %v2123_v1  ;;  %v841_v63 = vmul.f32 %v2348_v49, %v2348_v49  ;;  %v3413_v60 = vld [vmem:[#allocation11_spill] sm:$0xff] }
 0x195   :  { %v2378_v49 = vsub.f32 %v3413_v60, %v2123_v1  ;;  %v3419_v60 = vld [vmem:[#allocation14_spill] sm:$0xff] }
 0x196   :  { %v900_v46 = vadd.f32 %v899_v3, %v837_v47  ;;  %3408 = vst [vmem:[#allocation7_spill] sm:$0xff] %v2360_v41  ;;  %v3409_v3 = vld [vmem:[#allocation9_spill] sm:$0xff] }
 0x197   :  { %v2366_v42 = vsub.f32 %v3409_v3, %v2123_v1  ;;  %3412 = vst [vmem:[#allocation9_spill] sm:$0xff] %v2372_v53  ;;  %3414 = vst [vmem:[#allocation10_spill] sm:$0xff] %v2378_v49  ;;  %v3415_v3 = vld [vmem:[#allocation12_spill] sm:$0xff] }
 0x198   :  { %v901_v21 = vadd.f32 %v900_v46, %v838_v54  ;;  %v842_v54 = vmul.f32 %v2354_v29, %v2354_v29  ;;  %v2384_v29 = vsub.f32 %v3415_v3, %v2123_v1  ;;  %v3421_v3 = vld [vmem:[#allocation15_spill] sm:$0xff] }
 0x199   :  { %3410 = vst [vmem:[#allocation8_spill] sm:$0xff] %v2366_v42 }
 0x19a   :  { %v902_v34 = vadd.f32 %v901_v21, %v839_v58  ;;  %v843_v58 = vmul.f32 %v2360_v41, %v2360_v41  ;;  %3416 = vst [vmem:[#allocation11_spill] sm:$0xff] %v2384_v29  ;;  %v2390_v41 = vsub.f32 %v3417_v16, %v2123_v1  ;;  %v3423_v16 = vld [vmem:[#allocation16_spill] sm:$0xff] }
 0x19c   :  { %v903_v47 = vadd.f32 %v902_v34, %v840_v56  ;;  %v844_v56 = vmul.f32 %v2366_v42, %v2366_v42  ;;  %3418 = vst [vmem:[#allocation12_spill] sm:$0xff] %v2390_v41  ;;  %v2396_v42 = vsub.f32 %v3419_v60, %v2123_v1  ;;  %v3425_v60 = vld [vmem:[#allocation17_spill] sm:$0xff] }
 0x19e   :  { %v904_v46 = vadd.f32 %v903_v47, %v841_v63  ;;  %v845_v63 = vmul.f32 %v2372_v53, %v2372_v53  ;;  %3420 = vst [vmem:[#allocation13_spill] sm:$0xff] %v2396_v42  ;;  %v2402_v53 = vsub.f32 %v3421_v3, %v2123_v1  ;;  %v3427_v3 = vld [vmem:[#allocation18_spill] sm:$0xff] }
 0x1a0   :  { %v905_v21 = vadd.f32 %v904_v46, %v842_v54  ;;  %v846_v54 = vmul.f32 %v2378_v49, %v2378_v49  ;;  %3422 = vst [vmem:[#allocation14_spill] sm:$0xff] %v2402_v53  ;;  %v2408_v49 = vsub.f32 %v3423_v16, %v2123_v1  ;;  %v3428_v16 = vld [vmem:[#allocation19_spill] sm:$0xff] }
 0x1a2   :  { %v906_v34 = vadd.f32 %v905_v21, %v843_v58  ;;  %v847_v58 = vmul.f32 %v2384_v29, %v2384_v29  ;;  %3424 = vst [vmem:[#allocation15_spill] sm:$0xff] %v2408_v49  ;;  %v2414_v29 = vsub.f32 %v3425_v60, %v2123_v1  ;;  %v3430_v60 = vld [vmem:[#allocation20_spill] sm:$0xff] }
 0x1a4   :  { %v907_v47 = vadd.f32 %v906_v34, %v844_v56  ;;  %v848_v56 = vmul.f32 %v2390_v41, %v2390_v41  ;;  %3426 = vst [vmem:[#allocation16_spill] sm:$0xff] %v2414_v29  ;;  %v2420_v41 = vsub.f32 %v3427_v3, %v2123_v1  ;;  %v3431_v3 = vld [vmem:[#allocation21_spill] sm:$0xff] }
 0x1a6   :  { %v908_v46 = vadd.f32 %v907_v47, %v845_v63  ;;  %v849_v63 = vmul.f32 %v2396_v42, %v2396_v42  ;;  %v2426_v42 = vsub.f32 %v3428_v16, %v2123_v1  ;;  %v3432_v16 = vld [vmem:[#allocation22_spill] sm:$0xff] }
 0x1a8   :  { %v909_v21 = vadd.f32 %v908_v46, %v846_v54  ;;  %v850_v54 = vmul.f32 %v2402_v53, %v2402_v53  ;;  %3429 = vst [vmem:[#allocation17_spill] sm:$0xff] %v2426_v42  ;;  %v2432_v53 = vsub.f32 %v3430_v60, %v2123_v1 }
 0x1aa   :  { %v910_v34 = vadd.f32 %v909_v21, %v847_v58  ;;  %v851_v58 = vmul.f32 %v2408_v49, %v2408_v49  ;;  %v2438_v49 = vsub.f32 %v3431_v3, %v2123_v1 }
 0x1ac   :  { %v911_v47 = vadd.f32 %v910_v34, %v848_v56  ;;  %v852_v56 = vmul.f32 %v2414_v29, %v2414_v29  ;;  %v2444_v29 = vsub.f32 %v3432_v16, %v2123_v1  ;;  %v856_v60 = vmul.f32 %v2438_v49, %v2438_v49 }
 0x1ad   :  { %v859_v1 = vmul.f32 %v2129_v62, %v2129_v62  ;;  %v860_v16 = vmul.f32 %v2132_v43, %v2132_v43 }
 0x1ae   :  { %v912_v46 = vadd.f32 %v911_v47, %v849_v63  ;;  %v853_v63 = vmul.f32 %v2420_v41, %v2420_v41 }
 0x1b0   :  { %v913_v21 = vadd.f32 %v912_v46, %v850_v54  ;;  %v854_v54 = vmul.f32 %v2426_v42, %v2426_v42  ;;  %v858_v42 = vmul.f32 %v2126_v57, %v2126_v57 }
 0x1b2   :  { %v914_v34 = vadd.f32 %v913_v21, %v851_v58  ;;  %v855_v58 = vmul.f32 %v2432_v53, %v2432_v53 }
 0x1b4   :  { %v915_v47 = vadd.f32 %v914_v34, %v852_v56  ;;  %v857_v34 = vmul.f32 %v2444_v29, %v2444_v29 }
 0x1b6   :  { %v916_v46 = vadd.f32 %v915_v47, %v853_v63 }
 0x1b8   :  { %v917_v21 = vadd.f32 %v916_v46, %v854_v54  ;;  %v861_v46 = vmul.f32 %v2135_v6, %v2135_v6 }
 0x1ba   :  { %v918_v56 = vadd.f32 %v917_v21, %v855_v58  ;;  %v862_v21 = vmul.f32 %v2138_v33, %v2138_v33 }
 0x1bc   :  { %v919_v3 = vadd.f32 %v918_v56, %v856_v60  ;;  %v863_v56 = vmul.f32 %v2141_v23, %v2141_v23 }
 0x1be   :  { %v920_v63 = vadd.f32 %v919_v3, %v857_v34  ;;  %v864_v3 = vmul.f32 %v2144_v10, %v2144_v10 }
 0x1c0   :  { %v921_v47 = vadd.f32 %v920_v63, %v858_v42  ;;  %v865_v63 = vmul.f32 %v2147_v48, %v2147_v48 }
 0x1c2   :  { %v922_v54 = vadd.f32 %v921_v47, %v859_v1  ;;  %v866_v47 = vmul.f32 %v2150_v31, %v2150_v31 }
 0x1c4   :  { %v923_v58 = vadd.f32 %v922_v54, %v860_v16  ;;  %v867_v54 = vmul.f32 %v2153_v13, %v2153_v13 }
 0x1c6   :  { %v924_v60 = vadd.f32 %v923_v58, %v861_v46  ;;  %v868_v58 = vmul.f32 %v2156_v14, %v2156_v14 }
 0x1c8   :  { %v925_v34 = vadd.f32 %v924_v60, %v862_v21  ;;  %v869_v60 = vmul.f32 %v2159_v24, %v2159_v24 }
 0x1ca   :  { %v926_v42 = vadd.f32 %v925_v34, %v863_v56  ;;  %v870_v34 = vmul.f32 %v2162_v17, %v2162_v17 }
 0x1cc   :  { %v927_v1 = vadd.f32 %v926_v42, %v864_v3  ;;  %v871_v42 = vmul.f32 %v2165_v45, %v2165_v45 }
 0x1ce   :  { %v928_v16 = vadd.f32 %v927_v1, %v865_v63  ;;  %v872_v1 = vmul.f32 %v2168_v59, %v2168_v59 }
 0x1d0   :  { %v929_v46 = vadd.f32 %v928_v16, %v866_v47  ;;  %v873_v16 = vmul.f32 %v2171_v20, %v2171_v20 }
 0x1d2   :  { %v930_v21 = vadd.f32 %v929_v46, %v867_v54  ;;  %v874_v46 = vmul.f32 %v2174_v0, %v2174_v0 }
 0x1d4   :  { %v931_v56 = vadd.f32 %v930_v21, %v868_v58  ;;  %v875_v21 = vmul.f32 %v2177_v55, %v2177_v55 }
 0x1d6   :  { %v932_v3 = vadd.f32 %v931_v56, %v869_v60  ;;  %v876_v56 = vmul.f32 %v2180_v37, %v2180_v37 }
 0x1d8   :  { %v933_v63 = vadd.f32 %v932_v3, %v870_v34 }
 0x1da   :  { %v934_v47 = vadd.f32 %v933_v63, %v871_v42 }
 0x1dc   :  { %v935_v54 = vadd.f32 %v934_v47, %v872_v1 }
 0x1de   :  { %v936_v58 = vadd.f32 %v935_v54, %v873_v16  ;;  %v2495_v16 = vld [vmem:[%s3338_s3] ss:$0 sm:$0xff]  ;;  %s1579_s3 = smov [#allocation2]  }
 0x1e0   :  { %v937_v60 = vadd.f32 %v936_v58, %v874_v46 }
 0x1e2   :  { %v938_v34 = vadd.f32 %v937_v60, %v875_v21 }
 0x1e4   :  { %v939_v3 = vadd.f32 %v938_v34, %v876_v56  ;;  %v3434_v56 = vld [vmem:[#allocation5_spill] sm:$0xff]  ;;  %v3435_v34 = vld [vmem:[#allocation6_spill] sm:$0xff] }
 0x1e6   :  { %v940_v45 = vrot.slane %v939_v3, 4 }
 0x1e8   :  { %v941_v59 = vadd.f32 %v940_v45, %v939_v3  ;;  %v3436_v3 = vld [vmem:[#allocation7_spill] sm:$0xff] }
 0x1ea   :  { %v942_v42 = vrot.slane %v941_v59, 2 }
 0x1ec   :  { %v943_v63 = vadd.f32 %v942_v42, %v941_v59  ;;  %v3437_v42 = vld [vmem:[#allocation8_spill] sm:$0xff] }
 0x1ee   :  { %v944_v17 = vrot.slane %v943_v63, 1 }
 0x1f0   :  { %v945_v20 = vadd.f32 %v944_v17, %v943_v63  ;;  %v3438_v63 = vld [vmem:[#allocation9_spill] sm:$0xff] }
 0x1f2   :  { %v946_v1 = vmul.f32 0.001953125, %v945_v20  ;;  %v2514_v20 = vld [vmem:[%s3339_s4] ss:$0 sm:$0xff]  ;;  %s1288_s4 = sshll.u32 %s1579_s3, 4  ;;  %s3321_s4 = int_to_ptr.vmem [resolvable:$true] %s1288_s4 }
 0x1f3   :  { %3433 = vst [vmem:[#allocation18_spill] sm:$0xff] %v2514_v20  ;;  %s1557_s30 = scalar_lea.vmem %s3321_s4, 8192  ;;  %p1562_p1 = scmp.lt.s32.totalorder %s3321_s4, %s3321_s4 }
 0x1f4   :  { %v947_v47 = vadd.f32 1e-05, %v946_v1  ;;  %v3439_v1 = vld [vmem:[#allocation10_spill] sm:$0xff]  ;;  %p1558_p0 = scmp.ne.s32.totalorder %s3321_s4, %s1557_s30  ;;  %p1563_p2 = scmp.lt.s32.totalorder %s1557_s30, %s1557_s30 }
 0x1f6   :  { %1555 = vrsqrt.f32 %v947_v47  ;;  %p1564_p3 = por %p1563_p2, %p1562_p1 }
 0x1f8   :  { %p1565_p4 = pnand %p1564_p3, %p1558_p0 }
 0x203   :  { %v2490_v0 = vpop.eup %1555 }
 0x204   :  { %v1011_v54 = vmul.f32 %v2490_v0, %v2177_v55  ;;  %v2501_v45 = vmul.f32 %v2490_v0, %v2184_v26  ;;  %v2505_v17 = vmul.f32 %v2490_v0, %v2188_v5  ;;  %v2509_v59 = vmul.f32 %v2490_v0, %v2192_v4 }
 0x205   :  { %v2518_v55 = vmul.f32 %v2490_v0, %v2200_v38  ;;  %v2522_v26 = vmul.f32 %v2490_v0, %v2204_v8  ;;  %v2526_v5 = vmul.f32 %v2490_v0, %v2210_v15  ;;  %v2530_v4 = vmul.f32 %v2490_v0, %v2216_v18 }
 0x206   :  { %v1082_v46 = vmul.f32 %v2495_v16, %v1011_v54  ;;  %v2535_v58 = vmul.f32 %v2490_v0, %v2222_v9  ;;  %v2539_v38 = vmul.f32 %v2490_v0, %v2228_v2  ;;  %v2543_v8 = vmul.f32 %v2490_v0, %v2234_v19  ;;  %v3440_v54 = vld [vmem:[#allocation11_spill] sm:$0xff] }
 0x207   :  { %v2547_v15 = vmul.f32 %v2490_v0, %v2240_v50  ;;  %v2551_v18 = vmul.f32 %v2490_v0, %v2246_v27  ;;  %v2555_v9 = vmul.f32 %v2490_v0, %v2252_v52  ;;  %v2559_v2 = vmul.f32 %v2490_v0, %v2258_v36 }
 0x208   :  { %v1153_v21 = vadd.f32 %v2514_v20, %v1082_v46  ;;  %v2564_v19 = vmul.f32 %v2490_v0, %v2264_v51  ;;  %v2568_v50 = vmul.f32 %v2490_v0, %v2270_v61  ;;  %v2572_v27 = vmul.f32 %v2490_v0, %v2276_v12  ;;  %v3446_v20 = vld [vmem:[#allocation16_spill] sm:$0xff] }
 0x209   :  { %v2576_v52 = vmul.f32 %v2490_v0, %v2282_v40  ;;  %v2580_v36 = vmul.f32 %v2490_v0, %v2288_v44  ;;  %v2584_v51 = vmul.f32 %v2490_v0, %v2294_v11  ;;  %v2588_v61 = vmul.f32 %v2490_v0, %v2300_v30 }
 0x20a   :  { %v1217_v60 = vmax.f32 %v1153_v21, 0.0  ;;  %v2592_v12 = vmul.f32 %v2490_v0, %v2306_v22  ;;  %v2596_v40 = vmul.f32 %v2490_v0, %v2312_v25  ;;  %v2600_v44 = vmul.f32 %v2490_v0, %v2318_v28  ;;  %v3441_v21 = vld [vmem:[#allocation12_spill] sm:$0xff] }
 0x20b   :  { %v2604_v11 = vmul.f32 %v2490_v0, %v2324_v32  ;;  %v2608_v30 = vmul.f32 %v2490_v0, %v2330_v35  ;;  %v2612_v22 = vmul.f32 %v2490_v0, %v2336_v39  ;;  %v2616_v25 = vmul.f32 %v2490_v0, %v2342_v7 }
 0x20c   :  { %1281 = vst [vmem:[#allocation2 + $0x1f0] sm:$0xff] %v1217_v60  ;;  %v2620_v28 = vmul.f32 %v2490_v0, %v3434_v56  ;;  %v2624_v32 = vmul.f32 %v2490_v0, %v3435_v34  ;;  %v2628_v35 = vmul.f32 %v2490_v0, %v3436_v3  ;;  %v2632_v39 = vmul.f32 %v2490_v0, %v3437_v42  ;;  %v3443_v56 = vld [vmem:[#allocation13_spill] sm:$0xff]  ;;  %v3444_v3 = vld [vmem:[#allocation14_spill] sm:$0xff] }
 0x20d   :  { %v2636_v7 = vmul.f32 %v2490_v0, %v3438_v63  ;;  %v2640_v47 = vmul.f32 %v2490_v0, %v3439_v1  ;;  %v2644_v46 = vmul.f32 %v2490_v0, %v3440_v54  ;;  %v2648_v60 = vmul.f32 %v2490_v0, %v3441_v21  ;;  %v3445_v63 = vld [vmem:[#allocation15_spill] sm:$0xff] }
 0x20e   :  { %v2652_v34 = vmul.f32 %v2490_v0, %v3443_v56  ;;  %v2656_v42 = vmul.f32 %v2490_v0, %v3444_v3  ;;  %v2660_v1 = vmul.f32 %v2490_v0, %v3445_v63  ;;  %v2664_v54 = vmul.f32 %v2490_v0, %v3446_v20 }
 0x20f   :  { %3442 = vst [vmem:[#allocation19_spill] sm:$0xff] %v2648_v60  ;;  %v2668_v21 = vmul.f32 %v2490_v0, %v2420_v41  ;;  %v3447_v60 = vld [vmem:[#allocation17_spill] sm:$0xff]  ;;  %v2676_v3 = vmul.f32 %v2490_v0, %v2432_v53  ;;  %v2680_v63 = vmul.f32 %v2490_v0, %v2438_v49  ;;  %v2684_v20 = vmul.f32 %v2490_v0, %v2444_v29 }
 0x210   :  { %v2672_v56 = vmul.f32 %v2490_v0, %v3447_v60  ;;  %v2688_v41 = vmul.f32 %v2490_v0, %v2126_v57  ;;  %v2692_v60 = vmul.f32 %v2490_v0, %v2129_v62  ;;  %v2696_v53 = vmul.f32 %v2490_v0, %v2132_v43 }
 0x211   :  { %v2700_v49 = vmul.f32 %v2490_v0, %v2135_v6  ;;  %v2704_v29 = vmul.f32 %v2490_v0, %v2138_v33  ;;  %v2708_v57 = vmul.f32 %v2490_v0, %v2141_v23  ;;  %v2712_v62 = vmul.f32 %v2490_v0, %v2144_v10 }
 0x212   :  { %v2716_v43 = vmul.f32 %v2490_v0, %v2147_v48  ;;  %v2720_v6 = vmul.f32 %v2490_v0, %v2150_v31  ;;  %v2724_v33 = vmul.f32 %v2490_v0, %v2153_v13  ;;  %v2728_v23 = vmul.f32 %v2490_v0, %v2156_v14 }
 0x213   :  { %3448 = vst [vmem:[#allocation20_spill] sm:$0xff] %v2712_v62  ;;  %v2732_v10 = vmul.f32 %v2490_v0, %v2159_v24  ;;  %v3453_v62 = vld [vmem:[#allocation23_spill] sm:$0xff] }
 0x214   :  { %3449 = vst [vmem:[#allocation21_spill] sm:$0xff] %v2716_v43  ;;  %3450 = vst [vmem:[#allocation22_spill] sm:$0xff] %v2720_v6  ;;  %v2736_v48 = vmul.f32 %v2490_v0, %v3453_v62  ;;  %v3454_v43 = vld [vmem:[#allocation24_spill] sm:$0xff]  ;;  %v3455_v6 = vld [vmem:[#allocation25_spill] sm:$0xff]  ;;  %v2756_v62 = vmul.f32 %v2490_v0, %v2180_v37  ;;  %v2780_v37 = vmul.f32 %v2495_v16, %v2526_v5 }
 0x215   :  { %3451 = vst [vmem:[#allocation5_spill] sm:$0xff] %v2724_v33  ;;  %3452 = vst [vmem:[#allocation6_spill] sm:$0xff] %v2728_v23  ;;  %v2740_v31 = vmul.f32 %v2490_v0, %v3454_v43  ;;  %v2744_v13 = vmul.f32 %v2490_v0, %v3455_v6  ;;  %v3456_v33 = vld [vmem:[#allocation26_spill] sm:$0xff]  ;;  %v3457_v23 = vld [vmem:[#allocation27_spill] sm:$0xff]  ;;  %v2760_v43 = vmul.f32 %v2495_v16, %v2501_v45 }
 0x216   :  { %v2748_v14 = vmul.f32 %v2490_v0, %v3456_v33  ;;  %v2752_v24 = vmul.f32 %v2490_v0, %v3457_v23  ;;  %v2764_v6 = vmul.f32 %v2495_v16, %v2505_v17  ;;  %v2768_v33 = vmul.f32 %v2495_v16, %v2509_v59 }
 0x217   :  { %v2772_v23 = vmul.f32 %v2495_v16, %v2518_v55  ;;  %v2776_v0 = vmul.f32 %v2495_v16, %v2522_v26  ;;  %v2784_v45 = vmul.f32 %v2495_v16, %v2530_v4  ;;  %v2788_v17 = vmul.f32 %v2495_v16, %v2535_v58 }
 0x218   :  { %v2792_v59 = vmul.f32 %v2495_v16, %v2539_v38  ;;  %v2796_v55 = vmul.f32 %v2495_v16, %v2543_v8  ;;  %v2800_v26 = vmul.f32 %v2495_v16, %v2547_v15  ;;  %v2804_v5 = vmul.f32 %v2495_v16, %v2551_v18 }
 0x219   :  { %v2808_v4 = vmul.f32 %v2495_v16, %v2555_v9  ;;  %v2812_v58 = vmul.f32 %v2495_v16, %v2559_v2  ;;  %v2816_v38 = vmul.f32 %v2495_v16, %v2564_v19  ;;  %v2820_v8 = vmul.f32 %v2495_v16, %v2568_v50 }
 0x21a   :  { %v2824_v15 = vmul.f32 %v2495_v16, %v2572_v27  ;;  %v2828_v18 = vmul.f32 %v2495_v16, %v2576_v52  ;;  %v2832_v9 = vmul.f32 %v2495_v16, %v2580_v36  ;;  %v2836_v2 = vmul.f32 %v2495_v16, %v2584_v51 }
 0x21b   :  { %v2840_v19 = vmul.f32 %v2495_v16, %v2588_v61  ;;  %v2844_v50 = vmul.f32 %v2495_v16, %v2592_v12  ;;  %v2848_v27 = vmul.f32 %v2495_v16, %v2596_v40  ;;  %v2852_v52 = vmul.f32 %v2495_v16, %v2600_v44 }
 0x21c   :  { %v2856_v36 = vmul.f32 %v2495_v16, %v2604_v11  ;;  %v2860_v51 = vmul.f32 %v2495_v16, %v2608_v30  ;;  %v2864_v61 = vmul.f32 %v2495_v16, %v2612_v22  ;;  %v2868_v12 = vmul.f32 %v2495_v16, %v2616_v25 }
 0x21d   :  { %v2872_v40 = vmul.f32 %v2495_v16, %v2620_v28  ;;  %v2876_v44 = vmul.f32 %v2495_v16, %v2624_v32  ;;  %v2880_v11 = vmul.f32 %v2495_v16, %v2628_v35  ;;  %v2884_v30 = vmul.f32 %v2495_v16, %v2632_v39  ;;  %v3458_v32 = vld [vmem:[#allocation19_spill] sm:$0xff] }
 0x21e   :  { %v2888_v22 = vmul.f32 %v2495_v16, %v2636_v7  ;;  %v2892_v25 = vmul.f32 %v2495_v16, %v2640_v47  ;;  %v2896_v28 = vmul.f32 %v2495_v16, %v2644_v46  ;;  %v2900_v35 = vmul.f32 %v2495_v16, %v3458_v32 }
 0x21f   :  { %v2904_v39 = vmul.f32 %v2495_v16, %v2652_v34  ;;  %v2908_v7 = vmul.f32 %v2495_v16, %v2656_v42  ;;  %v2912_v47 = vmul.f32 %v2495_v16, %v2660_v1  ;;  %v2916_v46 = vmul.f32 %v2495_v16, %v2664_v54 }
 0x220   :  { %v2920_v32 = vmul.f32 %v2495_v16, %v2668_v21  ;;  %v2924_v34 = vmul.f32 %v2495_v16, %v2672_v56  ;;  %v2928_v42 = vmul.f32 %v2495_v16, %v2676_v3  ;;  %v2932_v1 = vmul.f32 %v2495_v16, %v2680_v63 }
 0x221   :  { %v2936_v54 = vmul.f32 %v2495_v16, %v2684_v20  ;;  %v2940_v21 = vmul.f32 %v2495_v16, %v2688_v41  ;;  %v2944_v56 = vmul.f32 %v2495_v16, %v2692_v60  ;;  %v2948_v3 = vmul.f32 %v2495_v16, %v2696_v53 }
 0x222   :  { %v2952_v63 = vmul.f32 %v2495_v16, %v2700_v49  ;;  %v2956_v20 = vmul.f32 %v2495_v16, %v2704_v29  ;;  %v2960_v41 = vmul.f32 %v2495_v16, %v2708_v57 }
 0x223   :  { %3459 = vst [vmem:[#allocation7_spill] sm:$0xff] %v2940_v21  ;;  %3460 = vst [vmem:[#allocation8_spill] sm:$0xff] %v2944_v56  ;;  %v3464_v21 = vld [vmem:[#allocation20_spill] sm:$0xff]  ;;  %v3465_v56 = vld [vmem:[#allocation21_spill] sm:$0xff] }
 0x224   :  { %3461 = vst [vmem:[#allocation9_spill] sm:$0xff] %v2948_v3  ;;  %3462 = vst [vmem:[#allocation10_spill] sm:$0xff] %v2952_v63  ;;  %v2964_v60 = vmul.f32 %v2495_v16, %v3464_v21  ;;  %v2968_v53 = vmul.f32 %v2495_v16, %v3465_v56  ;;  %v3466_v3 = vld [vmem:[#allocation22_spill] sm:$0xff]  ;;  %v3467_v63 = vld [vmem:[#allocation5_spill] sm:$0xff]  ;;  %v2984_v21 = vmul.f32 %v2495_v16, %v2732_v10 }
 0x225   :  { %3463 = vst [vmem:[#allocation11_spill] sm:$0xff] %v2956_v20  ;;  %v2972_v49 = vmul.f32 %v2495_v16, %v3466_v3  ;;  %v2976_v29 = vmul.f32 %v2495_v16, %v3467_v63  ;;  %v3468_v20 = vld [vmem:[#allocation6_spill] sm:$0xff]  ;;  %v2988_v56 = vmul.f32 %v2495_v16, %v2736_v48  ;;  %v2992_v3 = vmul.f32 %v2495_v16, %v2740_v31 }
 0x226   :  { %v2980_v57 = vmul.f32 %v2495_v16, %v3468_v20  ;;  %v2996_v63 = vmul.f32 %v2495_v16, %v2744_v13  ;;  %v3000_v20 = vmul.f32 %v2495_v16, %v2748_v14  ;;  %v3004_v10 = vmul.f32 %v2495_v16, %v2752_v24 }
 0x227   :  { %3469 = vst [vmem:[#allocation12_spill] sm:$0xff] %v2988_v56  ;;  %v3008_v48 = vmul.f32 %v2495_v16, %v2756_v62  ;;  %v3470_v56 = vld [vmem:[#allocation18_spill] sm:$0xff] }
 0x228   :  { %v3012_v31 = vadd.f32 %v3470_v56, %v2760_v43  ;;  %v3016_v13 = vadd.f32 %v3470_v56, %v2764_v6  ;;  %v3020_v14 = vadd.f32 %v3470_v56, %v2768_v33  ;;  %v3024_v24 = vadd.f32 %v3470_v56, %v2772_v23 }
 0x229   :  { %v3028_v16 = vadd.f32 %v3470_v56, %v2776_v0  ;;  %v3032_v62 = vadd.f32 %v3470_v56, %v2780_v37  ;;  %v3036_v43 = vadd.f32 %v3470_v56, %v2784_v45  ;;  %v3040_v6 = vadd.f32 %v3470_v56, %v2788_v17 }
 0x22a   :  { %v3044_v33 = vadd.f32 %v3470_v56, %v2792_v59  ;;  %v3048_v23 = vadd.f32 %v3470_v56, %v2796_v55  ;;  %v3052_v0 = vadd.f32 %v3470_v56, %v2800_v26  ;;  %v3056_v37 = vadd.f32 %v3470_v56, %v2804_v5 }
 0x22b   :  { %v3060_v45 = vadd.f32 %v3470_v56, %v2808_v4  ;;  %v3064_v17 = vadd.f32 %v3470_v56, %v2812_v58  ;;  %v3068_v59 = vadd.f32 %v3470_v56, %v2816_v38  ;;  %v3072_v55 = vadd.f32 %v3470_v56, %v2820_v8 }
 0x22c   :  { %v3076_v26 = vadd.f32 %v3470_v56, %v2824_v15  ;;  %v3080_v5 = vadd.f32 %v3470_v56, %v2828_v18  ;;  %v3084_v4 = vadd.f32 %v3470_v56, %v2832_v9  ;;  %v3088_v58 = vadd.f32 %v3470_v56, %v2836_v2 }
 0x22d   :  { %v3092_v38 = vadd.f32 %v3470_v56, %v2840_v19  ;;  %v3096_v8 = vadd.f32 %v3470_v56, %v2844_v50  ;;  %v3100_v15 = vadd.f32 %v3470_v56, %v2848_v27  ;;  %v3104_v18 = vadd.f32 %v3470_v56, %v2852_v52 }
 0x22e   :  { %v3108_v9 = vadd.f32 %v3470_v56, %v2856_v36  ;;  %v3112_v2 = vadd.f32 %v3470_v56, %v2860_v51  ;;  %v3116_v19 = vadd.f32 %v3470_v56, %v2864_v61  ;;  %v3120_v50 = vadd.f32 %v3470_v56, %v2868_v12 }
 0x22f   :  { %v3124_v27 = vadd.f32 %v3470_v56, %v2872_v40  ;;  %v3128_v52 = vadd.f32 %v3470_v56, %v2876_v44  ;;  %v3132_v36 = vadd.f32 %v3470_v56, %v2880_v11  ;;  %v3136_v51 = vadd.f32 %v3470_v56, %v2884_v30 }
 0x230   :  { %v3140_v61 = vadd.f32 %v3470_v56, %v2888_v22  ;;  %v3144_v12 = vadd.f32 %v3470_v56, %v2892_v25  ;;  %v3148_v40 = vadd.f32 %v3470_v56, %v2896_v28  ;;  %v3152_v44 = vadd.f32 %v3470_v56, %v2900_v35 }
 0x231   :  { %v3156_v11 = vadd.f32 %v3470_v56, %v2904_v39  ;;  %v3160_v30 = vadd.f32 %v3470_v56, %v2908_v7  ;;  %v3164_v22 = vadd.f32 %v3470_v56, %v2912_v47  ;;  %v3168_v25 = vadd.f32 %v3470_v56, %v2916_v46  ;;  %v3475_v46 = vld [vmem:[#allocation7_spill] sm:$0xff] }
 0x232   :  { %v3172_v28 = vadd.f32 %v3470_v56, %v2920_v32  ;;  %v3176_v35 = vadd.f32 %v3470_v56, %v2924_v34  ;;  %v3180_v39 = vadd.f32 %v3470_v56, %v2928_v42  ;;  %v3184_v7 = vadd.f32 %v3470_v56, %v2932_v1 }
 0x233   :  { %v3188_v47 = vadd.f32 %v3470_v56, %v2936_v54  ;;  %v3192_v32 = vadd.f32 %v3470_v56, %v3475_v46  ;;  %v3212_v46 = vadd.f32 %v3470_v56, %v2960_v41  ;;  %v3232_v41 = vadd.f32 %v3470_v56, %v2980_v57 }
 0x234   :  { %3471 = vst [vmem:[#allocation13_spill] sm:$0xff] %v3172_v28  ;;  %3472 = vst [vmem:[#allocation14_spill] sm:$0xff] %v3176_v35  ;;  %v3476_v28 = vld [vmem:[#allocation8_spill] sm:$0xff]  ;;  %v3477_v35 = vld [vmem:[#allocation9_spill] sm:$0xff]  ;;  %v3252_v57 = vadd.f32 %v3470_v56, %v3000_v20  ;;  %v1160_v20 = vmax.f32 %v3032_v62, 0.0  ;;  %v1171_v62 = vmax.f32 %v3076_v26, 0.0 }
 0x235   :  { %3473 = vst [vmem:[#allocation15_spill] sm:$0xff] %v3180_v39  ;;  %3474 = vst [vmem:[#allocation16_spill] sm:$0xff] %v3184_v7  ;;  %v3196_v34 = vadd.f32 %v3470_v56, %v3476_v28  ;;  %v3200_v42 = vadd.f32 %v3470_v56, %v3477_v35  ;;  %v3478_v39 = vld [vmem:[#allocation10_spill] sm:$0xff]  ;;  %v3479_v7 = vld [vmem:[#allocation11_spill] sm:$0xff]  ;;  %v3216_v28 = vadd.f32 %v3470_v56, %v2964_v60  ;;  %v1182_v26 = vmax.f32 %v3120_v50, 0.0 }
 0x236   :  { %v3204_v1 = vadd.f32 %v3470_v56, %v3478_v39  ;;  %v3208_v54 = vadd.f32 %v3470_v56, %v3479_v7  ;;  %v3220_v35 = vadd.f32 %v3470_v56, %v2968_v53  ;;  %v3224_v39 = vadd.f32 %v3470_v56, %v2972_v49  ;;  %3485 = vst [vmem:[#allocation26_spill] sm:$0xff] %v3252_v57 }
 0x237   :  { %3480 = vst [vmem:[#allocation17_spill] sm:$0xff] %v3216_v28  ;;  %v3228_v7 = vadd.f32 %v3470_v56, %v2976_v29  ;;  %v3236_v60 = vadd.f32 %v3470_v56, %v2984_v21  ;;  %v3481_v28 = vld [vmem:[#allocation12_spill] sm:$0xff]  ;;  %v3244_v49 = vadd.f32 %v3470_v56, %v2992_v3  ;;  %v3248_v29 = vadd.f32 %v3470_v56, %v2996_v63 }
 0x238   :  { %v3240_v53 = vadd.f32 %v3470_v56, %v3481_v28  ;;  %v3256_v21 = vadd.f32 %v3470_v56, %v3004_v10  ;;  %v3260_v28 = vadd.f32 %v3470_v56, %v3008_v48  ;;  %v1156_v3 = vmax.f32 %v3016_v13, 0.0  ;;  %1224 = vst [vmem:[#allocation2 + $0x28] sm:$0xff] %v1160_v20  ;;  %1235 = vst [vmem:[#allocation2 + $0x80] sm:$0xff] %v1171_v62 }
 0x239   :  { %3483 = vst [vmem:[#allocation24_spill] sm:$0xff] %v3244_v49  ;;  %3484 = vst [vmem:[#allocation25_spill] sm:$0xff] %v3248_v29  ;;  %v1157_v49 = vmax.f32 %v3020_v14, 0.0  ;;  %v1158_v63 = vmax.f32 %v3024_v24, 0.0  ;;  %v1159_v29 = vmax.f32 %v3028_v16, 0.0  ;;  %v1161_v57 = vmax.f32 %v3036_v43, 0.0 }
 0x23a   :  { %3482 = vst [vmem:[#allocation23_spill] sm:$0xff] %v3240_v53  ;;  %3486 = vst [vmem:[#allocation27_spill] sm:$0xff] %v3256_v21  ;;  %v1155_v53 = vmax.f32 %v3012_v31, 0.0  ;;  %v1162_v10 = vmax.f32 %v3040_v6, 0.0  ;;  %v1163_v21 = vmax.f32 %v3044_v33, 0.0  ;;  %v1164_v56 = vmax.f32 %v3048_v23, 0.0 }
 0x23b   :  { %v1165_v48 = vmax.f32 %v3052_v0, 0.0  ;;  %1220 = vst [vmem:[#allocation2 + $0x8] sm:$0xff] %v1156_v3  ;;  %1221 = vst [vmem:[#allocation2 + $0x10] sm:$0xff] %v1157_v49  ;;  %v1166_v31 = vmax.f32 %v3056_v37, 0.0  ;;  %v1167_v13 = vmax.f32 %v3060_v45, 0.0  ;;  %v1168_v14 = vmax.f32 %v3064_v17, 0.0 }
 0x23c   :  { %1219 = vst [vmem:[#allocation2] sm:$0xff] %v1155_v53  ;;  %v1169_v24 = vmax.f32 %v3068_v59, 0.0  ;;  %1222 = vst [vmem:[#allocation2 + $0x18] sm:$0xff] %v1158_v63  ;;  %v1170_v16 = vmax.f32 %v3072_v55, 0.0  ;;  %v1172_v43 = vmax.f32 %v3080_v5, 0.0  ;;  %v1173_v6 = vmax.f32 %v3084_v4, 0.0 }
 0x23d   :  { %1223 = vst [vmem:[#allocation2 + $0x20] sm:$0xff] %v1159_v29  ;;  %1225 = vst [vmem:[#allocation2 + $0x30] sm:$0xff] %v1161_v57  ;;  %v1174_v33 = vmax.f32 %v3088_v58, 0.0  ;;  %v1175_v23 = vmax.f32 %v3092_v38, 0.0  ;;  %v1176_v0 = vmax.f32 %v3096_v8, 0.0  ;;  %v1177_v37 = vmax.f32 %v3100_v15, 0.0 }
 0x23e   :  { %1226 = vst [vmem:[#allocation2 + $0x38] sm:$0xff] %v1162_v10  ;;  %1227 = vst [vmem:[#allocation2 + $0x40] sm:$0xff] %v1163_v21  ;;  %v1178_v45 = vmax.f32 %v3104_v18, 0.0  ;;  %v1179_v17 = vmax.f32 %v3108_v9, 0.0  ;;  %v1180_v59 = vmax.f32 %v3112_v2, 0.0  ;;  %v1181_v55 = vmax.f32 %v3116_v19, 0.0 }
 0x23f   :  { %1228 = vst [vmem:[#allocation2 + $0x48] sm:$0xff] %v1164_v56  ;;  %1229 = vst [vmem:[#allocation2 + $0x50] sm:$0xff] %v1165_v48  ;;  %v1183_v5 = vmax.f32 %v3124_v27, 0.0  ;;  %v1184_v4 = vmax.f32 %v3128_v52, 0.0  ;;  %v1185_v58 = vmax.f32 %v3132_v36, 0.0  ;;  %v1186_v38 = vmax.f32 %v3136_v51, 0.0 }
 0x240   :  { %1230 = vst [vmem:[#allocation2 + $0x58] sm:$0xff] %v1166_v31  ;;  %1231 = vst [vmem:[#allocation2 + $0x60] sm:$0xff] %v1167_v13  ;;  %v1187_v8 = vmax.f32 %v3140_v61, 0.0  ;;  %v1188_v15 = vmax.f32 %v3144_v12, 0.0  ;;  %v1189_v18 = vmax.f32 %v3148_v40, 0.0  ;;  %v1190_v9 = vmax.f32 %v3152_v44, 0.0 }
 0x241   :  { %1232 = vst [vmem:[#allocation2 + $0x68] sm:$0xff] %v1168_v14  ;;  %1233 = vst [vmem:[#allocation2 + $0x70] sm:$0xff] %v1169_v24  ;;  %v1191_v2 = vmax.f32 %v3156_v11, 0.0  ;;  %v1192_v19 = vmax.f32 %v3160_v30, 0.0  ;;  %v1193_v50 = vmax.f32 %v3164_v22, 0.0  ;;  %v1194_v27 = vmax.f32 %v3168_v25, 0.0 }
 0x242   :  { %1234 = vst [vmem:[#allocation2 + $0x78] sm:$0xff] %v1170_v16  ;;  %1236 = vst [vmem:[#allocation2 + $0x88] sm:$0xff] %v1172_v43  ;;  %v3487_v52 = vld [vmem:[#allocation13_spill] sm:$0xff]  ;;  %v3488_v51 = vld [vmem:[#allocation14_spill] sm:$0xff]  ;;  %v1199_v30 = vmax.f32 %v3188_v47, 0.0  ;;  %v1200_v22 = vmax.f32 %v3192_v32, 0.0 }
 0x243   :  { %1237 = vst [vmem:[#allocation2 + $0x90] sm:$0xff] %v1173_v6  ;;  %1238 = vst [vmem:[#allocation2 + $0x98] sm:$0xff] %v1174_v33  ;;  %v1195_v36 = vmax.f32 %v3487_v52, 0.0  ;;  %v1196_v61 = vmax.f32 %v3488_v51, 0.0  ;;  %v3489_v12 = vld [vmem:[#allocation15_spill] sm:$0xff]  ;;  %v3490_v44 = vld [vmem:[#allocation16_spill] sm:$0xff] }
 0x244   :  { %1239 = vst [vmem:[#allocation2 + $0xa0] sm:$0xff] %v1175_v23  ;;  %1240 = vst [vmem:[#allocation2 + $0xa8] sm:$0xff] %v1176_v0  ;;  %v1197_v40 = vmax.f32 %v3489_v12, 0.0  ;;  %v1198_v11 = vmax.f32 %v3490_v44, 0.0  ;;  %v1201_v53 = vmax.f32 %v3196_v34, 0.0  ;;  %v1202_v25 = vmax.f32 %v3200_v42, 0.0 }
 0x245   :  { %1241 = vst [vmem:[#allocation2 + $0xb0] sm:$0xff] %v1177_v37  ;;  %1242 = vst [vmem:[#allocation2 + $0xb8] sm:$0xff] %v1178_v45  ;;  %v1203_v49 = vmax.f32 %v3204_v1, 0.0  ;;  %v1204_v29 = vmax.f32 %v3208_v54, 0.0  ;;  %v1205_v57 = vmax.f32 %v3212_v46, 0.0  ;;  %v3491_v47 = vld [vmem:[#allocation17_spill] sm:$0xff] }
 0x246   :  { %1243 = vst [vmem:[#allocation2 + $0xc0] sm:$0xff] %v1179_v17  ;;  %1244 = vst [vmem:[#allocation2 + $0xc8] sm:$0xff] %v1180_v59  ;;  %v1206_v32 = vmax.f32 %v3491_v47, 0.0  ;;  %v1207_v34 = vmax.f32 %v3220_v35, 0.0  ;;  %v1208_v21 = vmax.f32 %v3224_v39, 0.0  ;;  %v1209_v3 = vmax.f32 %v3228_v7, 0.0 }
 0x247   :  { %1245 = vst [vmem:[#allocation2 + $0xd0] sm:$0xff] %v1181_v55  ;;  %1246 = vst [vmem:[#allocation2 + $0xd8] sm:$0xff] %v1182_v26  ;;  %v1210_v42 = vmax.f32 %v3232_v41, 0.0  ;;  %v1211_v1 = vmax.f32 %v3236_v60, 0.0  ;;  %v3492_v54 = vld [vmem:[#allocation23_spill] sm:$0xff]  ;;  %v3493_v63 = vld [vmem:[#allocation24_spill] sm:$0xff] }
 0x248   :  { %1247 = vst [vmem:[#allocation2 + $0xe0] sm:$0xff] %v1183_v5  ;;  %1248 = vst [vmem:[#allocation2 + $0xe8] sm:$0xff] %v1184_v4  ;;  %v1212_v46 = vmax.f32 %v3492_v54, 0.0  ;;  %v1213_v20 = vmax.f32 %v3493_v63, 0.0  ;;  %v3494_v35 = vld [vmem:[#allocation25_spill] sm:$0xff]  ;;  %v3495_v7 = vld [vmem:[#allocation26_spill] sm:$0xff] }
 0x249   :  { %1249 = vst [vmem:[#allocation2 + $0xf0] sm:$0xff] %v1185_v58  ;;  %1250 = vst [vmem:[#allocation2 + $0xf8] sm:$0xff] %v1186_v38  ;;  %v1214_v39 = vmax.f32 %v3494_v35, 0.0  ;;  %v1215_v10 = vmax.f32 %v3495_v7, 0.0  ;;  %v3496_v56 = vld [vmem:[#allocation27_spill] sm:$0xff]  ;;  %v1218_v60 = vmax.f32 %v3260_v28, 0.0 }
 0x24a   :  { %1251 = vst [vmem:[#allocation2 + $0x100] sm:$0xff] %v1187_v8  ;;  %1252 = vst [vmem:[#allocation2 + $0x108] sm:$0xff] %v1188_v15  ;;  %v1216_v41 = vmax.f32 %v3496_v56, 0.0 }
 0x24b   :  { %1253 = vst [vmem:[#allocation2 + $0x110] sm:$0xff] %v1189_v18  ;;  %1254 = vst [vmem:[#allocation2 + $0x118] sm:$0xff] %v1190_v9 }
 0x24c   :  { %1255 = vst [vmem:[#allocation2 + $0x120] sm:$0xff] %v1191_v2  ;;  %1256 = vst [vmem:[#allocation2 + $0x128] sm:$0xff] %v1192_v19 }
 0x24d   :  { %1257 = vst [vmem:[#allocation2 + $0x130] sm:$0xff] %v1193_v50  ;;  %1258 = vst [vmem:[#allocation2 + $0x138] sm:$0xff] %v1194_v27 }
 0x24e   :  { %1259 = vst [vmem:[#allocation2 + $0x140] sm:$0xff] %v1195_v36  ;;  %1260 = vst [vmem:[#allocation2 + $0x148] sm:$0xff] %v1196_v61 }
 0x24f   :  { %1261 = vst [vmem:[#allocation2 + $0x150] sm:$0xff] %v1197_v40  ;;  %1262 = vst [vmem:[#allocation2 + $0x158] sm:$0xff] %v1198_v11 }
 0x250   :  { %1263 = vst [vmem:[#allocation2 + $0x160] sm:$0xff] %v1199_v30  ;;  %1264 = vst [vmem:[#allocation2 + $0x168] sm:$0xff] %v1200_v22 }
 0x251   :  { %1265 = vst [vmem:[#allocation2 + $0x170] sm:$0xff] %v1201_v53  ;;  %1266 = vst [vmem:[#allocation2 + $0x178] sm:$0xff] %v1202_v25 }
 0x252   :  { %1267 = vst [vmem:[#allocation2 + $0x180] sm:$0xff] %v1203_v49  ;;  %1268 = vst [vmem:[#allocation2 + $0x188] sm:$0xff] %v1204_v29 }
 0x253   :  { %1269 = vst [vmem:[#allocation2 + $0x190] sm:$0xff] %v1205_v57  ;;  %1270 = vst [vmem:[#allocation2 + $0x198] sm:$0xff] %v1206_v32 }
 0x254   :  { %1271 = vst [vmem:[#allocation2 + $0x1a0] sm:$0xff] %v1207_v34  ;;  %1272 = vst [vmem:[#allocation2 + $0x1a8] sm:$0xff] %v1208_v21 }
 0x255   :  { %1273 = vst [vmem:[#allocation2 + $0x1b0] sm:$0xff] %v1209_v3  ;;  %1274 = vst [vmem:[#allocation2 + $0x1b8] sm:$0xff] %v1210_v42 }
 0x256   :  { %1275 = vst [vmem:[#allocation2 + $0x1c0] sm:$0xff] %v1211_v1  ;;  %1276 = vst [vmem:[#allocation2 + $0x1c8] sm:$0xff] %v1212_v46 }
 0x257   :  { %1277 = vst [vmem:[#allocation2 + $0x1d0] sm:$0xff] %v1213_v20  ;;  %1278 = vst [vmem:[#allocation2 + $0x1d8] sm:$0xff] %v1214_v39 }
 0x258   :  { %1279 = vst [vmem:[#allocation2 + $0x1e0] sm:$0xff] %v1215_v10  ;;  %1280 = vst [vmem:[#allocation2 + $0x1e8] sm:$0xff] %v1216_v41 }
 0x259   :  { %1282 = vst [vmem:[#allocation2 + $0x1f8] sm:$0xff] %v1218_v60 }
 0x25a   :  { %1568 = shalt.err (!%p1565_p4)
}
 0x25b   :  { %s1580_s6 = smov 128   ;;  %s1581_s7 = smov 8  }
 0x25c   :  { %1294 = dma.vmem_to_hbm [thread:$0]  %s3321_s4, 8192, %s3340_s5, [#allocation3], %s1580_s6, %s1580_s6, %s1581_s7  }
 0x25d   :  { %1577 = dma.done.wait [#allocation3], 8192  }
 0x25e   :  { %1578 = vsyncadd [#allocation3], 4294959104 }
 0x25f   :  { %1298 = vsyncpa [#allocation3], 1 }

</bundles_post_ra>
